<compile_context>
chip_gen: v6e
topology: v6e:2x2x1
jax: 0.10.0
libtpu: 0.0.40
codegen_flags: <defaults>
</compile_context>

<pallas_src>
import functools

import jax
import jax.numpy as jnp
import numpy as np
from jax.experimental import pallas as pl
from jax.experimental.pallas import tpu as pltpu

_EPS = 1e-5
_PAD = 2


# ----------------------------- structural constants (numpy) -----------------------------
def _conv_tap_matrices(K, L_in, L_out, pad):
    """D[t, m, l] = 1 iff unpadded input index m == l + t - pad (valid conv tap)."""
    D = np.zeros((K, L_in, L_out), np.float32)
    for t in range(K):
        for l in range(L_out):
            m = l + t - pad
            if 0 <= m < L_in:
                D[t, m, l] = 1.0
    return D


def _segment_matrix(C, L):
    """S[c*L + l, c'] = [c == c']  (per-channel segment indicator)."""
    return np.kron(np.eye(C, dtype=np.float32), np.ones((L, 1), np.float32))


def _pool_matrix(L, Lp):
    """AvgPool1d(3,3) as a matrix; rows beyond 3*Lp stay zero (trailing drop)."""
    P = np.zeros((L, Lp), np.float32)
    for p in range(Lp):
        P[3 * p:3 * p + 3, p] = 1.0 / 3.0
    return P


# ---------------------------------------- kernel ----------------------------------------
def _make_kernel(N, L1, L2, eps=_EPS):
    inv_cnt1 = 1.0 / float(N * L1)
    inv_cnt2 = 1.0 / float(N * L2)

    def bn_relu(y, s, st, g_row, be_row, inv_cnt):
        # y: (N, C*L) channel-major flat.  s: (C*L, C)  st: (C, C*L)  g/be: (1, C)
        seg_sum = jnp.sum(jnp.dot(y, s, preferred_element_type=jnp.float32),
                          axis=0, keepdims=True)                      # (1, C)
        seg_sq = jnp.sum(jnp.dot(y * y, s, preferred_element_type=jnp.float32),
                         axis=0, keepdims=True)                       # (1, C)
        mean = seg_sum * inv_cnt
        var = jnp.maximum(seg_sq * inv_cnt - mean * mean, 0.0)        # biased var (training BN)
        a = g_row * jax.lax.rsqrt(var + eps)                          # (1, C)
        b = be_row - a * mean                                         # (1, C)
        a_b = jnp.dot(a, st, preferred_element_type=jnp.float32)      # (1, C*L) broadcast
        b_b = jnp.dot(b, st, preferred_element_type=jnp.float32)      # (1, C*L)
        return jnp.maximum(a_b * y + b_b, 0.0)

    def kernel(x_ref, w1_ref, b1_ref, s1_ref, s1t_ref, g1_ref, be1_ref,
               w2_ref, b2_ref, s2_ref, s2t_ref, g2_ref, be2_ref,
               pf_ref, fcb_ref, out_ref):
        x = x_ref[...]                                                 # (N, L)

        # conv1 (zero-padding folded into W1big)  -> (N, C1*L1)
        y1 = jnp.dot(x, w1_ref[...], preferred_element_type=jnp.float32) + b1_ref[...]
        y1 = bn_relu(y1, s1_ref[...], s1t_ref[...], g1_ref[...], be1_ref[...], inv_cnt1)

        # conv2 (zero-padding folded into W2big)  -> (N, C2*L2)
        y2 = jnp.dot(y1, w2_ref[...], preferred_element_type=jnp.float32) + b2_ref[...]
        y2 = bn_relu(y2, s2_ref[...], s2t_ref[...], g2_ref[...], be2_ref[...], inv_cnt2)

        # AvgPool1d(3,3) + flatten + Linear fused into PF  -> (N, Dout)
        logits = jnp.dot(y2, pf_ref[...], preferred_element_type=jnp.float32) + fcb_ref[...]
        sig = pl.reciprocal(1.0 + jnp.exp(-logits), approx=True)       # EUP reciprocal
        out_ref[...] = 0.01 + sig                                      # single store

    return kernel


# ---------------------------------------- wrapper ---------------------------------------
def analyze_layer_pallas(x, params, *, out_layer, kernel_size, input_layer):
    """x: (N, 1, L) float32, NCL like PyTorch. Returns `out.squeeze()` equivalent."""
    N, Cin, L = x.shape
    assert Cin == 1
    K = kernel_size
    C1 = out_layer
    C2 = out_layer * 2
    L1 = L + 2 * _PAD - (K - 1)          # stride=1, dilation=1
    L2 = L1 + 2 * _PAD - (K - 1)
    Lp = (L2 - 3) // 3 + 1
    Dout = input_layer
    linear_unit = C2 * Lp

    (w1, b1, g1, be1, w2, b2, g2, be2, fcW, fcb) = params
    assert fcW.shape == (Dout, linear_unit), (fcW.shape, (Dout, linear_unit))
    assert 3 * Lp <= L2

    f32 = jnp.float32

    # -------- structural constants (pure numpy, depend only on static shapes) --------
    D1 = _conv_tap_matrices(K, L, L1, _PAD)                     # (K, L,  L1)
    D2 = _conv_tap_matrices(K, L1, L2, _PAD)                    # (K, L1, L2)
    S1 = _segment_matrix(C1, L1)                                # (C1*L1, C1)
    S2 = _segment_matrix(C2, L2)                                # (C2*L2, C2)
    PoolBig = np.kron(np.eye(C2, dtype=np.float32), _pool_matrix(L2, Lp))   # (C2*L2, C2*Lp)

    # -------- fold weights into dense matmul operands (tiny jnp ops under jit) --------
    x2d = x[:, 0, :].astype(f32)                                               # (N, L)
    W1big = jnp.einsum('ct,tml->mcl', w1.astype(f32), D1).reshape(L, C1 * L1)  # (L, C1*L1)
    W2big = jnp.einsum('oit,tml->imol', w2.astype(f32), D2).reshape(C1 * L1, C2 * L2)
    PF = jnp.dot(jnp.asarray(PoolBig), fcW.astype(f32).T)                      # (C2*L2, Dout)
    b1rep = jnp.repeat(b1.astype(f32).reshape(-1), L1).reshape(1, C1 * L1)
    b2rep = jnp.repeat(b2.astype(f32).reshape(-1), L2).reshape(1, C2 * L2)
    g1row, be1row = g1.astype(f32).reshape(1, C1), be1.astype(f32).reshape(1, C1)
    g2row, be2row = g2.astype(f32).reshape(1, C2), be2.astype(f32).reshape(1, C2)
    fcbrow = fcb.astype(f32).reshape(1, Dout)

    kernel = _make_kernel(N, L1, L2)
    vmem = pl.BlockSpec(memory_space=pltpu.MemorySpace.VMEM)

    out = pl.pallas_call(
        kernel,
        out_shape=jax.ShapeDtypeStruct((N, Dout), f32),
        in_specs=[vmem] * 15,
        out_specs=vmem,
    )(x2d, W1big, b1rep, jnp.asarray(S1), jnp.asarray(np.ascontiguousarray(S1.T)),
      g1row, be1row,
      W2big, b2rep, jnp.asarray(S2), jnp.asarray(np.ascontiguousarray(S2.T)),
      g2row, be2row, PF, fcbrow)

    return jnp.squeeze(out)   # mirrors `out.squeeze()`


# ----------------------------- pure-JAX reference ---------------------------------
def analyze_layer_ref(x, params, *, out_layer, kernel_size, input_layer):
    (w1, b1, g1, be1, w2, b2, g2, be2, fcW, fcb) = params
    eps = 1e-5

    def conbr(y, w, b, g, be):
        y = jax.lax.conv_general_dilated(
            y, w, window_strides=(1,), padding=[(2, 2)],
            dimension_numbers=('NCH', 'OIH', 'NCH'),
            precision=jax.lax.Precision.HIGHEST)
        y = y + b.reshape(1, -1, 1)
        m = jnp.mean(y, axis=(0, 2), keepdims=True)
        v = jnp.mean((y - m) ** 2, axis=(0, 2), keepdims=True)
        y = g.reshape(1, -1, 1) * (y - m) / jnp.sqrt(v + eps) + be.reshape(1, -1, 1)
        return jnp.maximum(y, 0.0)

    y = conbr(x, w1[:, None, :], b1, g1, be1)           # (N, C1, L1)
    y = conbr(y, w2, b2, g2, be2)                       # (N, C2, L2)
    N, C2, L2 = y.shape
    Lp = (L2 - 3) // 3 + 1
    y = y[:, :, :3 * Lp].reshape(N, C2, Lp, 3).mean(axis=-1)
    flat = y.reshape(N, -1)
    logits = jnp.dot(flat, fcW.T, precision=jax.lax.Precision.HIGHEST) + fcb.reshape(1, -1)
    return jnp.squeeze(0.01 + jax.nn.sigmoid(logits))


if __name__ == "__main__":
    # Small config: analyze_layer(input_layer=8, out_layer=4, kernel_size=5, stride=1, linear_unit=128)
    N, L = 2, 48
    out_layer, kernel_size = 4, 5
    C2 = out_layer * 2
    input_layer = 8
    linear_unit = 128            # = 2*out_layer * ((L - 3)//3 + 1) = 8 * 16

    f32 = jnp.float32
    key = jax.random.PRNGKey(0)
    keys = jax.random.split(key, 11)
    w1 = 0.3 * jax.random.normal(keys[0], (out_layer, kernel_size), f32)      # Conv1d(1,C1,K) weight (in-ch squeezed)
    b1 = 0.1 * jax.random.normal(keys[1], (out_layer, 1), f32)
    g1 = 1.0 + 0.1 * jax.random.normal(keys[2], (out_layer, 1), f32)
    be1 = 0.1 * jax.random.normal(keys[3], (out_layer, 1), f32)
    w2 = 0.2 * jax.random.normal(keys[4], (C2, out_layer, kernel_size), f32)  # Conv1d(C1,C2,K) weight (O,I,K)
    b2 = 0.1 * jax.random.normal(keys[5], (C2, 1), f32)
    g2 = 1.0 + 0.1 * jax.random.normal(keys[6], (C2, 1), f32)
    be2 = 0.1 * jax.random.normal(keys[7], (C2, 1), f32)
    fcW = 0.1 * jax.random.normal(keys[8], (input_layer, linear_unit), f32)   # Linear(linear_unit, input_layer)
    fcb = 0.1 * jax.random.normal(keys[9], (1, input_layer), f32)
    x = jax.random.normal(keys[10], (N, 1, L), f32)

    params = (w1, b1, g1, be1, w2, b2, g2, be2, fcW, fcb)

    run = jax.jit(functools.partial(analyze_layer_pallas, out_layer=out_layer,
                                    kernel_size=kernel_size, input_layer=input_layer))
    out = jax.block_until_ready(run(x, params))

    ref = analyze_layer_ref(x, params, out_layer=out_layer,
                            kernel_size=kernel_size, input_layer=input_layer)
    np.testing.assert_allclose(np.asarray(out), np.asarray(ref), atol=1e-3, rtol=1e-3)

    print("KERNEL_OK")
</pallas_src>

<mosaic_0001>
module attributes {stable_mosaic.version = 11 : i64} {
  func.func @kernel(%arg0: memref<2x48xf32, #tpu.memory_space<vmem>>, %arg1: memref<48x192xf32, #tpu.memory_space<vmem>>, %arg2: memref<1x192xf32, #tpu.memory_space<vmem>>, %arg3: memref<192x4xf32, #tpu.memory_space<vmem>>, %arg4: memref<4x192xf32, #tpu.memory_space<vmem>>, %arg5: memref<1x4xf32, #tpu.memory_space<vmem>>, %arg6: memref<1x4xf32, #tpu.memory_space<vmem>>, %arg7: memref<192x384xf32, #tpu.memory_space<vmem>>, %arg8: memref<1x384xf32, #tpu.memory_space<vmem>>, %arg9: memref<384x8xf32, #tpu.memory_space<vmem>>, %arg10: memref<8x384xf32, #tpu.memory_space<vmem>>, %arg11: memref<1x8xf32, #tpu.memory_space<vmem>>, %arg12: memref<1x8xf32, #tpu.memory_space<vmem>>, %arg13: memref<384x8xf32, #tpu.memory_space<vmem>>, %arg14: memref<1x8xf32, #tpu.memory_space<vmem>>, %arg15: memref<2x8xf32, #tpu.memory_space<vmem>>) attributes {dimension_semantics = [], scalar_prefetch = 0 : i64, scratch_operands = 0 : i64, tpu.core_type = #tpu.core_type<tc>} {
    %c0 = arith.constant 0 : index
    %c0_0 = arith.constant 0 : index
    %0 = vector.load %arg0[%c0, %c0_0] : memref<2x48xf32, #tpu.memory_space<vmem>>, vector<2x48xf32>
    %c0_1 = arith.constant 0 : index
    %c0_2 = arith.constant 0 : index
    %1 = vector.load %arg1[%c0_1, %c0_2] : memref<48x192xf32, #tpu.memory_space<vmem>>, vector<48x192xf32>
    %cst = arith.constant dense<0.000000e+00> : vector<2x192xf32>
    %2 = tpu.matmul %0, %1, %cst {dimension_numbers = #tpu.dot_dimension_numbers<[1], [0], [0], [1], [0, 0, 1, 1], [], []>} : vector<2x48xf32>, vector<48x192xf32>, vector<2x192xf32> -> vector<2x192xf32>
    %c0_3 = arith.constant 0 : index
    %c0_4 = arith.constant 0 : index
    %3 = vector.load %arg2[%c0_3, %c0_4] : memref<1x192xf32, #tpu.memory_space<vmem>>, vector<1x192xf32>
    %4 = vector.broadcast %3 : vector<1x192xf32> to vector<2x192xf32>
    %5 = arith.addf %2, %4 : vector<2x192xf32>
    %c0_5 = arith.constant 0 : index
    %c0_6 = arith.constant 0 : index
    %6 = vector.load %arg3[%c0_5, %c0_6] : memref<192x4xf32, #tpu.memory_space<vmem>>, vector<192x4xf32>
    %c0_7 = arith.constant 0 : index
    %c0_8 = arith.constant 0 : index
    %7 = vector.load %arg4[%c0_7, %c0_8] : memref<4x192xf32, #tpu.memory_space<vmem>>, vector<4x192xf32>
    %c0_9 = arith.constant 0 : index
    %c0_10 = arith.constant 0 : index
    %8 = vector.load %arg5[%c0_9, %c0_10] : memref<1x4xf32, #tpu.memory_space<vmem>>, vector<1x4xf32>
    %c0_11 = arith.constant 0 : index
    %c0_12 = arith.constant 0 : index
    %9 = vector.load %arg6[%c0_11, %c0_12] : memref<1x4xf32, #tpu.memory_space<vmem>>, vector<1x4xf32>
    %cst_13 = arith.constant dense<0.000000e+00> : vector<2x4xf32>
    %10 = tpu.matmul %5, %6, %cst_13 {dimension_numbers = #tpu.dot_dimension_numbers<[1], [0], [0], [1], [0, 0, 1, 1], [], []>} : vector<2x192xf32>, vector<192x4xf32>, vector<2x4xf32> -> vector<2x4xf32>
    %cst_14 = arith.constant dense<0.000000e+00> : vector<4xf32>
    %11 = vector.multi_reduction <add>, %10, %cst_14 [0] : vector<2x4xf32> to vector<4xf32>
    %12 = vector.shape_cast %11 : vector<4xf32> to vector<1x4xf32>
    %13 = arith.mulf %5, %5 : vector<2x192xf32>
    %cst_15 = arith.constant dense<0.000000e+00> : vector<2x4xf32>
    %14 = tpu.matmul %13, %6, %cst_15 {dimension_numbers = #tpu.dot_dimension_numbers<[1], [0], [0], [1], [0, 0, 1, 1], [], []>} : vector<2x192xf32>, vector<192x4xf32>, vector<2x4xf32> -> vector<2x4xf32>
    %cst_16 = arith.constant dense<0.000000e+00> : vector<4xf32>
    %15 = vector.multi_reduction <add>, %14, %cst_16 [0] : vector<2x4xf32> to vector<4xf32>
    %16 = vector.shape_cast %15 : vector<4xf32> to vector<1x4xf32>
    %cst_17 = arith.constant 0.010416667 : f32
    %17 = vector.broadcast %cst_17 : f32 to vector<1x4xf32>
    %18 = arith.mulf %12, %17 : vector<1x4xf32>
    %cst_18 = arith.constant 0.010416667 : f32
    %19 = vector.broadcast %cst_18 : f32 to vector<1x4xf32>
    %20 = arith.mulf %16, %19 : vector<1x4xf32>
    %21 = arith.mulf %18, %18 : vector<1x4xf32>
    %22 = arith.subf %20, %21 : vector<1x4xf32>
    %cst_19 = arith.constant 0.000000e+00 : f32
    %23 = vector.broadcast %cst_19 : f32 to vector<1x4xf32>
    %24 = arith.maximumf %22, %23 : vector<1x4xf32>
    %cst_20 = arith.constant 9.99999974E-6 : f32
    %25 = vector.broadcast %cst_20 : f32 to vector<1x4xf32>
    %26 = arith.addf %24, %25 : vector<1x4xf32>
    %27 = math.rsqrt %26 : vector<1x4xf32>
    %28 = arith.mulf %8, %27 : vector<1x4xf32>
    %29 = arith.mulf %28, %18 : vector<1x4xf32>
    %30 = arith.subf %9, %29 : vector<1x4xf32>
    %cst_21 = arith.constant dense<0.000000e+00> : vector<1x192xf32>
    %31 = tpu.matmul %28, %7, %cst_21 {dimension_numbers = #tpu.dot_dimension_numbers<[1], [0], [0], [1], [0, 0, 1, 1], [], []>} : vector<1x4xf32>, vector<4x192xf32>, vector<1x192xf32> -> vector<1x192xf32>
    %cst_22 = arith.constant dense<0.000000e+00> : vector<1x192xf32>
    %32 = tpu.matmul %30, %7, %cst_22 {dimension_numbers = #tpu.dot_dimension_numbers<[1], [0], [0], [1], [0, 0, 1, 1], [], []>} : vector<1x4xf32>, vector<4x192xf32>, vector<1x192xf32> -> vector<1x192xf32>
    %33 = vector.broadcast %31 : vector<1x192xf32> to vector<2x192xf32>
    %34 = arith.mulf %33, %5 : vector<2x192xf32>
    %35 = vector.broadcast %32 : vector<1x192xf32> to vector<2x192xf32>
    %36 = arith.addf %34, %35 : vector<2x192xf32>
    %cst_23 = arith.constant 0.000000e+00 : f32
    %37 = vector.broadcast %cst_23 : f32 to vector<2x192xf32>
    %38 = arith.maximumf %36, %37 : vector<2x192xf32>
    %c0_24 = arith.constant 0 : index
    %c0_25 = arith.constant 0 : index
    %39 = vector.load %arg7[%c0_24, %c0_25] : memref<192x384xf32, #tpu.memory_space<vmem>>, vector<192x384xf32>
    %cst_26 = arith.constant dense<0.000000e+00> : vector<2x384xf32>
    %40 = tpu.matmul %38, %39, %cst_26 {dimension_numbers = #tpu.dot_dimension_numbers<[1], [0], [0], [1], [0, 0, 1, 1], [], []>} : vector<2x192xf32>, vector<192x384xf32>, vector<2x384xf32> -> vector<2x384xf32>
    %c0_27 = arith.constant 0 : index
    %c0_28 = arith.constant 0 : index
    %41 = vector.load %arg8[%c0_27, %c0_28] : memref<1x384xf32, #tpu.memory_space<vmem>>, vector<1x384xf32>
    %42 = vector.broadcast %41 : vector<1x384xf32> to vector<2x384xf32>
    %43 = arith.addf %40, %42 : vector<2x384xf32>
    %c0_29 = arith.constant 0 : index
    %c0_30 = arith.constant 0 : index
    %44 = vector.load %arg9[%c0_29, %c0_30] : memref<384x8xf32, #tpu.memory_space<vmem>>, vector<384x8xf32>
    %c0_31 = arith.constant 0 : index
    %c0_32 = arith.constant 0 : index
    %45 = vector.load %arg10[%c0_31, %c0_32] : memref<8x384xf32, #tpu.memory_space<vmem>>, vector<8x384xf32>
    %c0_33 = arith.constant 0 : index
    %c0_34 = arith.constant 0 : index
    %46 = vector.load %arg11[%c0_33, %c0_34] : memref<1x8xf32, #tpu.memory_space<vmem>>, vector<1x8xf32>
    %c0_35 = arith.constant 0 : index
    %c0_36 = arith.constant 0 : index
    %47 = vector.load %arg12[%c0_35, %c0_36] : memref<1x8xf32, #tpu.memory_space<vmem>>, vector<1x8xf32>
    %cst_37 = arith.constant dense<0.000000e+00> : vector<2x8xf32>
    %48 = tpu.matmul %43, %44, %cst_37 {dimension_numbers = #tpu.dot_dimension_numbers<[1], [0], [0], [1], [0, 0, 1, 1], [], []>} : vector<2x384xf32>, vector<384x8xf32>, vector<2x8xf32> -> vector<2x8xf32>
    %cst_38 = arith.constant dense<0.000000e+00> : vector<8xf32>
    %49 = vector.multi_reduction <add>, %48, %cst_38 [0] : vector<2x8xf32> to vector<8xf32>
    %50 = vector.shape_cast %49 : vector<8xf32> to vector<1x8xf32>
    %51 = arith.mulf %43, %43 : vector<2x384xf32>
    %cst_39 = arith.constant dense<0.000000e+00> : vector<2x8xf32>
    %52 = tpu.matmul %51, %44, %cst_39 {dimension_numbers = #tpu.dot_dimension_numbers<[1], [0], [0], [1], [0, 0, 1, 1], [], []>} : vector<2x384xf32>, vector<384x8xf32>, vector<2x8xf32> -> vector<2x8xf32>
    %cst_40 = arith.constant dense<0.000000e+00> : vector<8xf32>
    %53 = vector.multi_reduction <add>, %52, %cst_40 [0] : vector<2x8xf32> to vector<8xf32>
    %54 = vector.shape_cast %53 : vector<8xf32> to vector<1x8xf32>
    %cst_41 = arith.constant 0.010416667 : f32
    %55 = vector.broadcast %cst_41 : f32 to vector<1x8xf32>
    %56 = arith.mulf %50, %55 : vector<1x8xf32>
    %cst_42 = arith.constant 0.010416667 : f32
    %57 = vector.broadcast %cst_42 : f32 to vector<1x8xf32>
    %58 = arith.mulf %54, %57 : vector<1x8xf32>
    %59 = arith.mulf %56, %56 : vector<1x8xf32>
    %60 = arith.subf %58, %59 : vector<1x8xf32>
    %cst_43 = arith.constant 0.000000e+00 : f32
    %61 = vector.broadcast %cst_43 : f32 to vector<1x8xf32>
    %62 = arith.maximumf %60, %61 : vector<1x8xf32>
    %cst_44 = arith.constant 9.99999974E-6 : f32
    %63 = vector.broadcast %cst_44 : f32 to vector<1x8xf32>
    %64 = arith.addf %62, %63 : vector<1x8xf32>
    %65 = math.rsqrt %64 : vector<1x8xf32>
    %66 = arith.mulf %46, %65 : vector<1x8xf32>
    %67 = arith.mulf %66, %56 : vector<1x8xf32>
    %68 = arith.subf %47, %67 : vector<1x8xf32>
    %cst_45 = arith.constant dense<0.000000e+00> : vector<1x384xf32>
    %69 = tpu.matmul %66, %45, %cst_45 {dimension_numbers = #tpu.dot_dimension_numbers<[1], [0], [0], [1], [0, 0, 1, 1], [], []>} : vector<1x8xf32>, vector<8x384xf32>, vector<1x384xf32> -> vector<1x384xf32>
    %cst_46 = arith.constant dense<0.000000e+00> : vector<1x384xf32>
    %70 = tpu.matmul %68, %45, %cst_46 {dimension_numbers = #tpu.dot_dimension_numbers<[1], [0], [0], [1], [0, 0, 1, 1], [], []>} : vector<1x8xf32>, vector<8x384xf32>, vector<1x384xf32> -> vector<1x384xf32>
    %71 = vector.broadcast %69 : vector<1x384xf32> to vector<2x384xf32>
    %72 = arith.mulf %71, %43 : vector<2x384xf32>
    %73 = vector.broadcast %70 : vector<1x384xf32> to vector<2x384xf32>
    %74 = arith.addf %72, %73 : vector<2x384xf32>
    %cst_47 = arith.constant 0.000000e+00 : f32
    %75 = vector.broadcast %cst_47 : f32 to vector<2x384xf32>
    %76 = arith.maximumf %74, %75 : vector<2x384xf32>
    %c0_48 = arith.constant 0 : index
    %c0_49 = arith.constant 0 : index
    %77 = vector.load %arg13[%c0_48, %c0_49] : memref<384x8xf32, #tpu.memory_space<vmem>>, vector<384x8xf32>
    %cst_50 = arith.constant dense<0.000000e+00> : vector<2x8xf32>
    %78 = tpu.matmul %76, %77, %cst_50 {dimension_numbers = #tpu.dot_dimension_numbers<[1], [0], [0], [1], [0, 0, 1, 1], [], []>} : vector<2x384xf32>, vector<384x8xf32>, vector<2x8xf32> -> vector<2x8xf32>
    %c0_51 = arith.constant 0 : index
    %c0_52 = arith.constant 0 : index
    %79 = vector.load %arg14[%c0_51, %c0_52] : memref<1x8xf32, #tpu.memory_space<vmem>>, vector<1x8xf32>
    %80 = vector.broadcast %79 : vector<1x8xf32> to vector<2x8xf32>
    %81 = arith.addf %78, %80 : vector<2x8xf32>
    %cst_53 = arith.constant 0.000000e+00 : f32
    %82 = vector.broadcast %cst_53 : f32 to vector<2x8xf32>
    %83 = arith.subf %82, %81 : vector<2x8xf32>
    %84 = math.exp %83 : vector<2x8xf32>
    %cst_54 = arith.constant 1.000000e+00 : f32
    %85 = vector.broadcast %cst_54 : f32 to vector<2x8xf32>
    %86 = arith.addf %85, %84 : vector<2x8xf32>
    %87 = tpu.reciprocal %86 {approx = true} : vector<2x8xf32> -> vector<2x8xf32>
    %cst_55 = arith.constant 0.00999999977 : f32
    %88 = vector.broadcast %cst_55 : f32 to vector<2x8xf32>
    %89 = arith.addf %88, %87 : vector<2x8xf32>
    %c0_56 = arith.constant 0 : index
    %c0_57 = arith.constant 0 : index
    %90 = vector.load %arg15[%c0_56, %c0_57] : memref<2x8xf32, #tpu.memory_space<vmem>>, vector<2x8xf32>
    tpu.vector_store %arg15[%c0_56, %c0_57], %89 {strides = array<i32>} : memref<2x8xf32, #tpu.memory_space<vmem>>, vector<2x8xf32>,
    return
  }
}

</mosaic_0001>

<bundles_post_ra>
// kernel: analyze_layer_pallas.1
= control target key start
LH: loop header
LB: loop body
LE: loop exit
PB: predicated region body
PF: predicated region fallthrough
CT: control target
= control target key end

     0   :  { %v1987_v4 = vmov 0.0   ;;  %vm76_vm0 = vcmask 392192   ;;  %s3124_s0 = inlined_call_operand.vmem [shape: f32[2,48], index: 0, kind: input, shape index: {}]   ;;  %s3125_s1 = inlined_call_operand.vmem [shape: f32[48,192], index: 1, kind: input, shape index: {}]   ;;  %s3126_s2 = inlined_call_operand.vmem [shape: f32[1,192], index: 2, kind: input, shape index: {}]   ;;  %s3127_s3 = inlined_call_operand.vmem [shape: f32[192,4], index: 3, kind: input, shape index: {}]   ;;  %s3128_s4 = inlined_call_operand.vmem [shape: f32[4,192], index: 4, kind: input, shape index: {}]   ;;  %s3129_s5 = inlined_call_operand.vmem [shape: f32[1,4], index: 5, kind: input, shape index: {}]   ;;  %s3130_s6 = inlined_call_operand.vmem [shape: f32[1,4], index: 6, kind: input, shape index: {}]   ;;  %s3131_s7 = inlined_call_operand.vmem [shape: f32[192,384], index: 7, kind: input, shape index: {}]   ;;  %s3132_s8 = inlined_call_operand.vmem [shape: f32[1,384], index: 8, kind: input, shape index: {}]   ;;  %s3133_s9 = inlined_call_operand.vmem [shape: f32[384,8], index: 9, kind: input, shape index: {}]   ;;  %s3134_s10 = inlined_call_operand.vmem [shape: f32[8,384], index: 10, kind: input, shape index: {}]   ;;  %s3135_s11 = inlined_call_operand.vmem [shape: f32[1,8], index: 11, kind: input, shape index: {}]   ;;  %s3136_s12 = inlined_call_operand.vmem [shape: f32[1,8], index: 12, kind: input, shape index: {}]   ;;  %s3137_s13 = inlined_call_operand.vmem [shape: f32[384,8], index: 13, kind: input, shape index: {}]   ;;  %s3138_s14 = inlined_call_operand.vmem [shape: f32[1,8], index: 14, kind: input, shape index: {}]   ;;  %s3139_s15 = inlined_call_operand.hbm [shape: f32[2,8], index: 15, kind: output, shape index: {}]  }
   0x1   :  { %v63_v0 = vld [vmem:[%s3125_s1 + $0x58] sm:$0xff]  ;;  %v62_v1 = vld [vmem:[%s3125_s1 + $0x50] sm:$0xff]  ;;  %v61_v2 = vld [vmem:[%s3125_s1 + $0x48] sm:$0xff]  ;;  %144 = vmatprep.mubr.f32.mxu0 %v1987_v4  ;;  %182 = vmatprep.subr.mxu1 %v1987_v4 }
   0x2   :  { %100 = vmatprep.subr.mxu0 %v63_v0  ;;  %v60_v3 = vld [vmem:[%s3125_s1 + $0x40] sm:$0xff]  ;;  %v59_v5 = vld [vmem:[%s3125_s1 + $0x38] sm:$0xff]  ;;  %v58_v6 = vld [vmem:[%s3125_s1 + $0x30] sm:$0xff] }
   0x3   :  { %101 = vmatpush1.msra.mxu0 %v62_v1  ;;  %v57_v7 = vld [vmem:[%s3125_s1 + $0x28] sm:$0xff]  ;;  %v166_v8 = vld [vmem:[%s3127_s3 + $0x78] sm:$0xff]  ;;  %v165_v9 = vld [vmem:[%s3127_s3 + $0x70] sm:$0xff] }
   0x4   :  { %102 = vmatprep.subr.mxu0 %v61_v2  ;;  %v56_v10 = vld [vmem:[%s3125_s1 + $0x20] sm:$0xff]  ;;  %183 = vmatpush1.msra.mxu1 %v166_v8  ;;  %v55_v11 = vld [vmem:[%s3125_s1 + $0x18] sm:$0xff]  ;;  %v164_v12 = vld [vmem:[%s3127_s3 + $0x68] sm:$0xff] }
   0x5   :  { %103 = vmatpush1.msra.mxu0 %v60_v3  ;;  %184 = vmatprep.subr.mxu1 %v1987_v4  ;;  %v54_v13 = vld [vmem:[%s3125_s1 + $0x10] sm:$0xff]  ;;  %v53_v14 = vld [vmem:[%s3125_s1 + $0x8] sm:$0xff]  ;;  %v163_v15 = vld [vmem:[%s3127_s3 + $0x60] sm:$0xff] }
   0x6   :  { %104 = vmatprep.subr.mxu0 %v59_v5  ;;  %185 = vmatpush1.msra.mxu1 %v165_v9  ;;  %v52_v16 = vld [vmem:[%s3125_s1] sm:$0xff]  ;;  %v162_v18 = vld [vmem:[%s3127_s3 + $0x58] sm:$0xff] }
   0x7   :  { %105 = vmatpush1.msra.mxu0 %v58_v6  ;;  %186 = vmatprep.subr.mxu1 %v1987_v4  ;;  %v51_v17 = vld [vmem:[%s3124_s0] sm:$0x3] }
   0x8   :  { %106 = vmatprep.subr.mxu0 %v57_v7  ;;  %187 = vmatpush1.msra.mxu1 %v164_v12 }
   0x9   :  { %107 = vmatpush1.msra.mxu0 %v56_v10  ;;  %188 = vmatprep.subr.mxu1 %v1987_v4 }
   0xa   :  { %108 = vmatprep.subr.mxu0 %v55_v11  ;;  %189 = vmatpush1.msra.mxu1 %v163_v15 }
   0xb   :  { %109 = vmatpush1.msra.mxu0 %v54_v13 }
   0xc   :  { %110 = vmatprep.subr.mxu0 %v53_v14 }
   0xd   :  { %20 = vsyncpa [#allocation3], 0  ;;  %111 = vmatpush1.msra.mxu0 %v52_v16  ;;  %190 = vmatprep.subr.mxu1 %v1987_v4  ;;  %v161_v19 = vld [vmem:[%s3127_s3 + $0x50] sm:$0xff]  ;;  %v160_v20 = vld [vmem:[%s3127_s3 + $0x48] sm:$0xff]  ;;  %v66_v38 = vlaneseq  ;;  %vm178_vm1 = vcmask 523264   ;;  %vm358_vm2 = vcmask 1043456  }
   0xe   :  { %1662 = vmatmul.mubr.msk.f32.vlgmr.msra.gmra.mxu0 %vm76_vm0, %v51_v17  ;;  %265 = vmatprep.subr.mxu0 %v1987_v4  ;;  %v159_v21 = vld [vmem:[%s3127_s3 + $0x40] sm:$0xff]  ;;  %v158_v22 = vld [vmem:[%s3127_s3 + $0x38] sm:$0xff]  ;;  %v157_v23 = vld [vmem:[%s3127_s3 + $0x30] sm:$0xff]  ;;  %vm252_vm3 = vcmask 25600   ;;  %vm354_vm4 = vcmask 31744   ;;  %vm1988_vm5 = vmmov 0  }
   0xf   :  { %266 = vmatpush1.msra.mxu0 %v166_v8  ;;  %191 = vmatpush1.msra.mxu1 %v162_v18  ;;  %v156_v24 = vld [vmem:[%s3127_s3 + $0x28] sm:$0xff]  ;;  %v155_v25 = vld [vmem:[%s3127_s3 + $0x20] sm:$0xff]  ;;  %v154_v26 = vld [vmem:[%s3127_s3 + $0x18] sm:$0xff]  ;;  %v2231_v39 = vshrl.u32 %v66_v38, 7  ;;  %vm956_vm6 = vcmask 58368   ;;  %vm1124_vm7 = vcmask 64512  }
  0x10   :  { %267 = vmatprep.subr.mxu0 %v1987_v4  ;;  %192 = vmatprep.subr.mxu1 %v1987_v4  ;;  %v153_v27 = vld [vmem:[%s3127_s3 + $0x10] sm:$0xff]  ;;  %v152_v28 = vld [vmem:[%s3127_s3 + $0x8] sm:$0xff]  ;;  %v151_v29 = vld [vmem:[%s3127_s3] sm:$0xff] }
  0x11   :  { %268 = vmatpush1.msra.mxu0 %v165_v9  ;;  %193 = vmatpush1.msra.mxu1 %v161_v19  ;;  %v174_v30 = vld [vmem:[%s3127_s3 + $0xb8] sm:$0xff]  ;;  %v173_v31 = vld [vmem:[%s3127_s3 + $0xb0] sm:$0xff]  ;;  %v172_v32 = vld [vmem:[%s3127_s3 + $0xa8] sm:$0xff]  ;;  %v2234_v40 = vsub.s32 0, %v2231_v39  ;;  %v72_v42 = vsub.s32 1, %v2231_v39 }
  0x12   :  { %269 = vmatprep.subr.mxu0 %v1987_v4  ;;  %194 = vmatprep.subr.mxu1 %v1987_v4  ;;  %v171_v33 = vld [vmem:[%s3127_s3 + $0xa0] sm:$0xff]  ;;  %v170_v34 = vld [vmem:[%s3127_s3 + $0x98] sm:$0xff]  ;;  %v169_v35 = vld [vmem:[%s3127_s3 + $0x90] sm:$0xff] }
  0x13   :  { %270 = vmatpush1.msra.mxu0 %v164_v12  ;;  %195 = vmatpush1.msra.mxu1 %v160_v20  ;;  %v168_v36 = vld [vmem:[%s3127_s3 + $0x88] sm:$0xff]  ;;  %v167_v37 = vld [vmem:[%s3127_s3 + $0x80] sm:$0xff]  ;;  %v577_v53 = vld [vmem:[%s3131_s7 + $0x178] sm:$0xff]  ;;  %s1989_s3 = smov [#allocation2]  }
  0x14   :  { %271 = vmatprep.subr.mxu0 %v1987_v4  ;;  %196 = vmatprep.subr.mxu1 %v1987_v4  ;;  %v64_v41 = vld [vmem:[%s3126_s2] sm:$0x3]  ;;  %v571_v55 = vld [vmem:[%s3131_s7 + $0x148] sm:$0xff]  ;;  %v568_v56 = vld [vmem:[%s3131_s7 + $0x130] sm:$0xff] }
  0x15   :  { %272 = vmatpush1.msra.mxu0 %v163_v15  ;;  %197 = vmatpush1.msra.mxu1 %v159_v21  ;;  %v69_v43 = vrot.slane %v64_v41, %v2234_v40  ;;  %v73_v44 = vrot.slane %v64_v41, %v72_v42  ;;  %v2259_v51 = vld [vmem:[%s3128_s4] sm:$0xff]  ;;  %v565_v57 = vld [vmem:[%s3131_s7 + $0x118] sm:$0xff]  ;;  %v559_v59 = vld [vmem:[%s3131_s7 + $0xe8] sm:$0xff] }
  0x16   :  { %273 = vmatprep.subr.mxu0 %v1987_v4  ;;  %198 = vmatprep.subr.mxu1 %v1987_v4  ;;  %v353_v52 = vcombine.high %v2259_v51, %v2259_v51  ;;  %v574_v54 = vld [vmem:[%s3131_s7 + $0x160] sm:$0xff]  ;;  %v556_v60 = vld [vmem:[%s3131_s7 + $0xd0] sm:$0xff]  ;;  %v553_v61 = vld [vmem:[%s3131_s7 + $0xb8] sm:$0xff] }
  0x17   :  { %274 = vmatpush1.msra.mxu0 %v162_v18  ;;  %199 = vmatpush1.msra.mxu1 %v158_v22  ;;  %v562_v58 = vld [vmem:[%s3131_s7 + $0x100] sm:$0xff]  ;;  %v547_v63 = vld [vmem:[%s3131_s7 + $0x88] sm:$0xff]  ;;  %v544_v0 = vld [vmem:[%s3131_s7 + $0x70] sm:$0xff] }
  0x18   :  { %275 = vmatprep.subr.mxu0 %v1987_v4  ;;  %200 = vmatprep.subr.mxu1 %v1987_v4  ;;  %v550_v62 = vld [vmem:[%s3131_s7 + $0xa0] sm:$0xff]  ;;  %v541_v1 = vld [vmem:[%s3131_s7 + $0x58] sm:$0xff]  ;;  %v535_v3 = vld [vmem:[%s3131_s7 + $0x28] sm:$0xff] }
  0x19   :  { %276 = vmatpush1.msra.mxu0 %v161_v19  ;;  %201 = vmatpush1.msra.mxu1 %v157_v23  ;;  %v538_v2 = vld [vmem:[%s3131_s7 + $0x40] sm:$0xff]  ;;  %v532_v5 = vld [vmem:[%s3131_s7 + $0x10] sm:$0xff]  ;;  %v601_v6 = vld [vmem:[%s3131_s7 + $0x238] sm:$0xff] }
  0x1a   :  { %277 = vmatprep.subr.mxu0 %v1987_v4  ;;  %202 = vmatprep.subr.mxu1 %v1987_v4  ;;  %v575_v38 = vld [vmem:[%s3131_s7 + $0x168] sm:$0xff]  ;;  %v573_v41 = vld [vmem:[%s3131_s7 + $0x158] sm:$0xff] }
  0x1b   :  { %278 = vmatpush1.msra.mxu0 %v160_v20  ;;  %203 = vmatpush1.msra.mxu1 %v156_v24 }
  0x1c   :  { %279 = vmatprep.subr.mxu0 %v1987_v4  ;;  %204 = vmatprep.subr.mxu1 %v1987_v4 }
  0x1d   :  { %280 = vmatpush1.msra.mxu0 %v159_v21  ;;  %205 = vmatpush1.msra.mxu1 %v155_v25 }
  0x1e   :  { %281 = vmatprep.subr.mxu0 %v1987_v4  ;;  %206 = vmatprep.subr.mxu1 %v1987_v4 }
  0x1f   :  { %282 = vmatpush1.msra.mxu0 %v158_v22  ;;  %207 = vmatpush1.msra.mxu1 %v154_v26 }
  0x20   :  { %283 = vmatprep.subr.mxu0 %v1987_v4  ;;  %208 = vmatprep.subr.mxu1 %v1987_v4 }
  0x21   :  { %284 = vmatpush1.msra.mxu0 %v157_v23  ;;  %209 = vmatpush1.msra.mxu1 %v153_v27 }
  0x22   :  { %285 = vmatprep.subr.mxu0 %v1987_v4  ;;  %210 = vmatprep.subr.mxu1 %v1987_v4 }
  0x23   :  { %286 = vmatpush1.msra.mxu0 %v156_v24  ;;  %211 = vmatpush1.msra.mxu1 %v152_v28 }
  0x24   :  { %287 = vmatprep.subr.mxu0 %v1987_v4  ;;  %212 = vmatprep.subr.mxu1 %v1987_v4 }
  0x25   :  { %288 = vmatpush1.msra.mxu0 %v155_v25  ;;  %213 = vmatpush1.msra.mxu1 %v151_v29 }
  0x26   :  { %289 = vmatprep.subr.mxu0 %v1987_v4  ;;  %230 = vmatprep.subr.mxu1 %v1987_v4 }
  0x27   :  { %290 = vmatpush1.msra.mxu0 %v154_v26  ;;  %231 = vmatpush2.msra.mxu1 %v174_v30 }
  0x28   :  { %291 = vmatprep.subr.mxu0 %v1987_v4  ;;  %232 = vmatprep.subr.mxu1 %v1987_v4 }
  0x29   :  { %292 = vmatpush1.msra.mxu0 %v153_v27  ;;  %233 = vmatpush2.msra.mxu1 %v173_v31 }
  0x2a   :  { %293 = vmatprep.subr.mxu0 %v1987_v4  ;;  %234 = vmatprep.subr.mxu1 %v1987_v4 }
  0x2b   :  { %294 = vmatpush1.msra.mxu0 %v152_v28  ;;  %235 = vmatpush2.msra.mxu1 %v172_v32 }
  0x2c   :  { %295 = vmatprep.subr.mxu0 %v1987_v4  ;;  %236 = vmatprep.subr.mxu1 %v1987_v4 }
  0x2d   :  { %296 = vmatpush1.msra.mxu0 %v151_v29  ;;  %237 = vmatpush2.msra.mxu1 %v171_v33 }
  0x2e   :  { %313 = vmatprep.subr.mxu0 %v1987_v4  ;;  %238 = vmatprep.subr.mxu1 %v1987_v4 }
  0x2f   :  { %314 = vmatpush2.msra.mxu0 %v174_v30  ;;  %239 = vmatpush2.msra.mxu1 %v170_v34 }
  0x30   :  { %315 = vmatprep.subr.mxu0 %v1987_v4  ;;  %240 = vmatprep.subr.mxu1 %v1987_v4 }
  0x31   :  { %316 = vmatpush2.msra.mxu0 %v173_v31  ;;  %241 = vmatpush2.msra.mxu1 %v169_v35  ;;  %v176_v31 = vld [vmem:[%s3129_s5] sm:$0x1] }
  0x32   :  { %317 = vmatprep.subr.mxu0 %v1987_v4  ;;  %242 = vmatprep.subr.mxu1 %v1987_v4 }
  0x33   :  { %318 = vmatpush2.msra.mxu0 %v172_v32  ;;  %243 = vmatpush2.msra.mxu1 %v168_v36 }
  0x34   :  { %319 = vmatprep.subr.mxu0 %v1987_v4  ;;  %244 = vmatprep.subr.mxu1 %v1987_v4 }
  0x35   :  { %320 = vmatpush2.msra.mxu0 %v171_v33  ;;  %245 = vmatpush2.msra.mxu1 %v167_v37 }
  0x36   :  { %321 = vmatprep.subr.mxu0 %v1987_v4  ;;  %1665 = vmatprep.subr.msk.mxu1 %vm358_vm2, %v353_v52 }
  0x37   :  { %322 = vmatpush2.msra.mxu0 %v170_v34  ;;  %v177_v34 = vld [vmem:[%s3130_s6] sm:$0x1] }
  0x38   :  { %323 = vmatprep.subr.mxu0 %v1987_v4 }
  0x39   :  { %324 = vmatpush2.msra.mxu0 %v169_v35  ;;  %v576_v35 = vld [vmem:[%s3131_s7 + $0x170] sm:$0xff] }
  0x3a   :  { %325 = vmatprep.subr.mxu0 %v1987_v4 }
  0x3b   :  { %326 = vmatpush2.msra.mxu0 %v168_v36 }
  0x3c   :  { %327 = vmatprep.subr.mxu0 %v1987_v4 }
  0x3d   :  { %328 = vmatpush2.msra.mxu0 %v167_v37 }
  0x3e   :  { %693 = vmatprep.subr.mxu0 %v1987_v4 }
  0xce   :  { %v146_v45 = vpop.f32.mrf.mxu0 }
  0xcf   :  { %v2243_v46 = vadd.f32 %v146_v45, %v69_v43  ;;  %v572_v43 = vld [vmem:[%s3131_s7 + $0x150] sm:$0xff]  ;;  %v569_v45 = vld [vmem:[%s3131_s7 + $0x138] sm:$0xff] }
  0xd0   :  { %v148_v47 = vpop.f32.mrf.mxu0 }
  0xd1   :  { %v2245_v48 = vadd.f32 %v148_v47, %v73_v44  ;;  %v260_v50 = vmul.f32 %v2243_v46, %v2243_v46  ;;  %v570_v44 = vld [vmem:[%s3131_s7 + $0x140] sm:$0xff]  ;;  %v567_v47 = vld [vmem:[%s3131_s7 + $0x128] sm:$0xff] }
  0xd3   :  { %v261_v49 = vmul.f32 %v2245_v48, %v2245_v48  ;;  %1663 = vmatprep.mubr.msk.f32.mxu1 %vm178_vm1, %v2245_v48 }
  0xd4   :  { %247 = vmatmul.mubr.f32.vlgmr.msra.gmra.mxu1 %v2243_v46 }
  0xd5   :  { %1664 = vmatprep.mubr.msk.f32.mxu0 %vm178_vm1, %v261_v49  ;;  %427 = vmatprep.mubr.f32.mxu1 %v1987_v4  ;;  %v566_v49 = vld [vmem:[%s3131_s7 + $0x120] sm:$0xff] }
  0xd6   :  { %330 = vmatmul.mubr.f32.vlgmr.msra.gmra.mxu0 %v260_v50  ;;  %1666 = vmatpush1.msk.msra.mxu1 %vm358_vm2, %v2259_v51  ;;  %v564_v50 = vld [vmem:[%s3131_s7 + $0x110] sm:$0xff] }
  0xd7   :  { %1668 = vmatprep.subr.msk.mxu1 %vm358_vm2, %v353_v52  ;;  %694 = vmatpush1.msra.mxu0 %v577_v53  ;;  %v561_v52 = vld [vmem:[%s3131_s7 + $0xf8] sm:$0xff]  ;;  %v560_v53 = vld [vmem:[%s3131_s7 + $0xf0] sm:$0xff] }
  0xd8   :  { %695 = vmatprep.subr.mxu0 %v1987_v4 }
  0xd9   :  { %696 = vmatpush1.msra.mxu0 %v574_v54  ;;  %v558_v54 = vld [vmem:[%s3131_s7 + $0xe0] sm:$0xff] }
  0xda   :  { %697 = vmatprep.subr.mxu0 %v1987_v4 }
  0xdb   :  { %698 = vmatpush1.msra.mxu0 %v571_v55  ;;  %v557_v55 = vld [vmem:[%s3131_s7 + $0xd8] sm:$0xff] }
  0xdc   :  { %699 = vmatprep.subr.mxu0 %v1987_v4 }
  0xdd   :  { %700 = vmatpush1.msra.mxu0 %v568_v56  ;;  %v555_v56 = vld [vmem:[%s3131_s7 + $0xc8] sm:$0xff] }
  0xde   :  { %701 = vmatprep.subr.mxu0 %v1987_v4 }
  0xdf   :  { %702 = vmatpush1.msra.mxu0 %v565_v57  ;;  %v554_v57 = vld [vmem:[%s3131_s7 + $0xc0] sm:$0xff] }
  0xe0   :  { %703 = vmatprep.subr.mxu0 %v1987_v4 }
  0xe1   :  { %704 = vmatpush1.msra.mxu0 %v562_v58  ;;  %v552_v58 = vld [vmem:[%s3131_s7 + $0xb0] sm:$0xff] }
  0xe2   :  { %705 = vmatprep.subr.mxu0 %v1987_v4 }
  0xe3   :  { %706 = vmatpush1.msra.mxu0 %v559_v59  ;;  %v551_v59 = vld [vmem:[%s3131_s7 + $0xa8] sm:$0xff] }
  0xe4   :  { %707 = vmatprep.subr.mxu0 %v1987_v4 }
  0xe5   :  { %708 = vmatpush1.msra.mxu0 %v556_v60  ;;  %v549_v60 = vld [vmem:[%s3131_s7 + $0x98] sm:$0xff] }
  0xe6   :  { %709 = vmatprep.subr.mxu0 %v1987_v4 }
  0xe7   :  { %710 = vmatpush1.msra.mxu0 %v553_v61  ;;  %v548_v61 = vld [vmem:[%s3131_s7 + $0x90] sm:$0xff] }
  0xe8   :  { %711 = vmatprep.subr.mxu0 %v1987_v4 }
  0xe9   :  { %712 = vmatpush1.msra.mxu0 %v550_v62  ;;  %v546_v62 = vld [vmem:[%s3131_s7 + $0x80] sm:$0xff] }
  0xea   :  { %713 = vmatprep.subr.mxu0 %v1987_v4 }
  0xeb   :  { %714 = vmatpush1.msra.mxu0 %v547_v63  ;;  %v545_v63 = vld [vmem:[%s3131_s7 + $0x78] sm:$0xff] }
  0xec   :  { %715 = vmatprep.subr.mxu0 %v1987_v4 }
  0xed   :  { %716 = vmatpush1.msra.mxu0 %v544_v0  ;;  %v543_v0 = vld [vmem:[%s3131_s7 + $0x68] sm:$0xff] }
  0xee   :  { %717 = vmatprep.subr.mxu0 %v1987_v4 }
  0xef   :  { %718 = vmatpush1.msra.mxu0 %v541_v1  ;;  %v542_v1 = vld [vmem:[%s3131_s7 + $0x60] sm:$0xff] }
  0xf0   :  { %719 = vmatprep.subr.mxu0 %v1987_v4 }
  0xf1   :  { %720 = vmatpush1.msra.mxu0 %v538_v2  ;;  %v540_v2 = vld [vmem:[%s3131_s7 + $0x50] sm:$0xff] }
  0xf2   :  { %721 = vmatprep.subr.mxu0 %v1987_v4 }
  0xf3   :  { %722 = vmatpush1.msra.mxu0 %v535_v3  ;;  %v539_v3 = vld [vmem:[%s3131_s7 + $0x48] sm:$0xff] }
  0xf4   :  { %723 = vmatprep.subr.mxu0 %v1987_v4 }
  0xf5   :  { %724 = vmatpush1.msra.mxu0 %v532_v5  ;;  %v537_v5 = vld [vmem:[%s3131_s7 + $0x38] sm:$0xff] }
  0xf6   :  { %741 = vmatprep.subr.mxu0 %v1987_v4 }
  0xf7   :  { %742 = vmatpush2.msra.mxu0 %v601_v6  ;;  %v536_v6 = vld [vmem:[%s3131_s7 + $0x30] sm:$0xff] }
  0xf8   :  { %743 = vmatprep.subr.mxu0 %v1987_v4 }
 0x194   :  { %v248_v7 = vpop.f32.mrf.mxu1 }
 0x195   :  { %v253_v8 = vsel %vm252_vm3, %v248_v7, 0.0  ;;  %v534_v7 = vld [vmem:[%s3131_s7 + $0x20] sm:$0xff] }
 0x196   :  { %v254_v9 = vrot.slane %v253_v8, 4  ;;  %v250_v10 = vpop.f32.mrf.mxu1  ;;  %v331_v11 = vpop.f32.mrf.mxu0 }
 0x197   :  { %v335_v12 = vsel %vm252_vm3, %v331_v11, 0.0  ;;  %v530_v10 = vld [vmem:[%s3131_s7] sm:$0xff]  ;;  %v600_v11 = vld [vmem:[%s3131_s7 + $0x230] sm:$0xff] }
 0x198   :  { %v255_v13 = vadd.f32 %v254_v9, %v253_v8  ;;  %v336_v14 = vrot.slane %v335_v12, 4  ;;  %v333_v15 = vpop.f32.mrf.mxu0  ;;  %v533_v8 = vld [vmem:[%s3131_s7 + $0x18] sm:$0xff]  ;;  %v531_v9 = vld [vmem:[%s3131_s7 + $0x8] sm:$0xff] }
 0x199   :  { %v598_v15 = vld [vmem:[%s3131_s7 + $0x220] sm:$0xff] }
 0x19a   :  { %v256_v16 = vrot.slane %v255_v13, 2  ;;  %v337_v17 = vadd.f32 %v336_v14, %v335_v12  ;;  %v599_v12 = vld [vmem:[%s3131_s7 + $0x228] sm:$0xff]  ;;  %v596_v14 = vld [vmem:[%s3131_s7 + $0x210] sm:$0xff]  ;;  %744 = vmatpush2.msra.mxu0 %v598_v15 }
 0x19b   :  { %745 = vmatprep.subr.mxu0 %v1987_v4  ;;  %v2693_v15 = vld [vmem:[%s3133_s9 + $0xb0] sm:$0xff] }
 0x19c   :  { %v257_v18 = vadd.f32 %v256_v16, %v255_v13  ;;  %v338_v19 = vrot.slane %v337_v17, 2  ;;  %v597_v13 = vld [vmem:[%s3131_s7 + $0x218] sm:$0xff]  ;;  %v594_v16 = vld [vmem:[%s3131_s7 + $0x200] sm:$0xff] }
 0x19e   :  { %v258_v20 = vrot.slane %v257_v18, 1  ;;  %v339_v21 = vadd.f32 %v338_v19, %v337_v17  ;;  %v593_v17 = vld [vmem:[%s3131_s7 + $0x1f8] sm:$0xff]  ;;  %v591_v19 = vld [vmem:[%s3131_s7 + $0x1e8] sm:$0xff] }
 0x1a0   :  { %v259_v22 = vadd.f32 %v258_v20, %v257_v18  ;;  %v340_v23 = vrot.slane %v339_v21, 1  ;;  %v595_v18 = vld [vmem:[%s3131_s7 + $0x208] sm:$0xff]  ;;  %v590_v20 = vld [vmem:[%s3131_s7 + $0x1e0] sm:$0xff] }
 0x1a1   :  { %746 = vmatpush2.msra.mxu0 %v595_v18  ;;  %v2712_v18 = vld [vmem:[%s3133_s9 + $0xa8] sm:$0xff] }
 0x1a2   :  { %v342_v24 = vmul.f32 0.010416667, %v259_v22  ;;  %v341_v25 = vadd.f32 %v340_v23, %v339_v21  ;;  %747 = vmatprep.subr.mxu0 %v1987_v4  ;;  %v592_v21 = vld [vmem:[%s3131_s7 + $0x1f0] sm:$0xff]  ;;  %v587_v23 = vld [vmem:[%s3131_s7 + $0x1c8] sm:$0xff] }
 0x1a3   :  { %748 = vmatpush2.msra.mxu0 %v592_v21  ;;  %v588_v22 = vld [vmem:[%s3131_s7 + $0x1d0] sm:$0xff]  ;;  %v2731_v21 = vld [vmem:[%s3133_s9 + $0xa0] sm:$0xff] }
 0x1a4   :  { %v344_v26 = vmul.f32 %v342_v24, %v342_v24  ;;  %v343_v27 = vmul.f32 0.010416667, %v341_v25  ;;  %749 = vmatprep.subr.mxu0 %v1987_v4  ;;  %v585_v25 = vld [vmem:[%s3131_s7 + $0x1b8] sm:$0xff] }
 0x1a6   :  { %v345_v28 = vsub.f32 %v343_v27, %v344_v26  ;;  %v584_v26 = vld [vmem:[%s3131_s7 + $0x1b0] sm:$0xff]  ;;  %v586_v27 = vld [vmem:[%s3131_s7 + $0x1c0] sm:$0xff] }
 0x1a8   :  { %v346_v29 = vmax.f32 %v345_v28, 0.0  ;;  %v582_v28 = vld [vmem:[%s3131_s7 + $0x1a0] sm:$0xff] }
 0x1aa   :  { %v347_v30 = vadd.f32 1e-05, %v346_v29  ;;  %v581_v29 = vld [vmem:[%s3131_s7 + $0x198] sm:$0xff] }
 0x1ac   :  { %1957 = vrsqrt.f32 %v347_v30  ;;  %v583_v30 = vld [vmem:[%s3131_s7 + $0x1a8] sm:$0xff] }
 0x1b9   :  { %v1958_v32 = vpop.eup %1957 }
 0x1ba   :  { %v349_v33 = vmul.f32 %v1958_v32, %v176_v31  ;;  %v579_v31 = vld [vmem:[%s3131_s7 + $0x188] sm:$0xff]  ;;  %v578_v32 = vld [vmem:[%s3131_s7 + $0x180] sm:$0xff] }
 0x1bc   :  { %1667 = vmatmul.mubr.msk.f32.vlgmr.msra.gmra.mxu1 %vm354_vm4, %v349_v33  ;;  %v350_v36 = vmul.f32 %v349_v33, %v342_v24  ;;  %v589_v24 = vld [vmem:[%s3131_s7 + $0x1d8] sm:$0xff]  ;;  %v580_v33 = vld [vmem:[%s3131_s7 + $0x190] sm:$0xff] }
 0x1bd   :  { %1669 = vmatpush1.msk.msra.mxu1 %vm358_vm2, %v2259_v51  ;;  %501 = vmatprep.mubr.f32.mxu1 %v1987_v4  ;;  %v563_v51 = vld [vmem:[%s3131_s7 + $0x108] sm:$0xff]  ;;  %s1654_s7 = sshll.u32 %s1989_s3, 4  ;;  %s1655_s7 = int_to_ptr.vmem [resolvable:$true] %s1654_s7 }
 0x1be   :  { %v351_v37 = vsub.f32 %v177_v34, %v350_v36  ;;  %622 = vmatprep.subr.mxu1 %v576_v35  ;;  %750 = vmatpush2.msra.mxu0 %v589_v24  ;;  %v2519_v34 = vld [vmem:[%s3133_s9 + $0xf8] sm:$0xff]  ;;  %s1965_s5 = scalar_lea.vmem %s1655_s7, 32  ;;  %p1970_p1 = scmp.lt.s32.totalorder %s1655_s7, %s1655_s7 }
 0x1bf   :  { %751 = vmatprep.subr.mxu0 %v1987_v4  ;;  %v2750_v24 = vld [vmem:[%s3133_s9 + $0x98] sm:$0xff]  ;;  %p1966_p0 = scmp.ne.s32.totalorder %s1655_s7, %s1965_s5  ;;  %p1971_p2 = scmp.lt.s32.totalorder %s1965_s5, %s1965_s5 }
 0x1c0   :  { %1670 = vmatmul.mubr.msk.f32.vlgmr.msra.gmra.mxu1 %vm354_vm4, %v351_v37  ;;  %752 = vmatpush2.msra.mxu0 %v586_v27  ;;  %v2769_v27 = vld [vmem:[%s3133_s9 + $0x90] sm:$0xff] }
 0x1c1   :  { %623 = vmatpush1.msra.mxu1 %v575_v38  ;;  %753 = vmatprep.subr.mxu0 %v1987_v4  ;;  %p1972_p3 = por %p1971_p2, %p1970_p1 }
 0x1c2   :  { %624 = vmatprep.subr.mxu1 %v573_v41  ;;  %754 = vmatpush2.msra.mxu0 %v583_v30  ;;  %v2794_v30 = vld [vmem:[%s3133_s9 + $0x10] sm:$0xff] }
 0x1c3   :  { %625 = vmatpush1.msra.mxu1 %v572_v43  ;;  %755 = vmatprep.subr.mxu0 %v1987_v4  ;;  %p1973_p4 = pnand %p1972_p3, %p1966_p0 }
 0x1c4   :  { %626 = vmatprep.subr.mxu1 %v570_v44  ;;  %756 = vmatpush2.msra.mxu0 %v580_v33  ;;  %v2812_v33 = vld [vmem:[%s3133_s9 + $0x8] sm:$0xff] }
 0x1c5   :  { %627 = vmatpush1.msra.mxu1 %v569_v45  ;;  %1838 = vmatprep.subr.mxu0 %v1987_v4 }
 0x1c6   :  { %628 = vmatprep.subr.mxu1 %v567_v47 }
 0x1c7   :  { %629 = vmatpush1.msra.mxu1 %v566_v49 }
 0x1c8   :  { %630 = vmatprep.subr.mxu1 %v564_v50 }
 0x1c9   :  { %631 = vmatpush1.msra.mxu1 %v563_v51 }
 0x1ca   :  { %632 = vmatprep.subr.mxu1 %v561_v52 }
 0x1cb   :  { %633 = vmatpush1.msra.mxu1 %v560_v53 }
 0x1cc   :  { %634 = vmatprep.subr.mxu1 %v558_v54  ;;  %v2531_v54 = vld [vmem:[%s3133_s9 + $0x178] sm:$0xff] }
 0x1cd   :  { %635 = vmatpush1.msra.mxu1 %v557_v55  ;;  %v2536_v55 = vld [vmem:[%s3133_s9 + $0x78] sm:$0xff] }
 0x1ce   :  { %636 = vmatprep.subr.mxu1 %v555_v56  ;;  %v2553_v56 = vld [vmem:[%s3133_s9 + $0x70] sm:$0xff] }
 0x1cf   :  { %637 = vmatpush1.msra.mxu1 %v554_v57  ;;  %v2560_v57 = vld [vmem:[%s3133_s9 + $0xe8] sm:$0xff] }
 0x1d0   :  { %638 = vmatprep.subr.mxu1 %v552_v58  ;;  %v2567_v58 = vld [vmem:[%s3133_s9 + $0x168] sm:$0xff] }
 0x1d1   :  { %639 = vmatpush1.msra.mxu1 %v551_v59  ;;  %v2572_v59 = vld [vmem:[%s3133_s9 + $0x68] sm:$0xff] }
 0x1d2   :  { %640 = vmatprep.subr.mxu1 %v549_v60  ;;  %v2579_v60 = vld [vmem:[%s3133_s9 + $0xe0] sm:$0xff] }
 0x1d3   :  { %641 = vmatpush1.msra.mxu1 %v548_v61  ;;  %v2586_v61 = vld [vmem:[%s3133_s9 + $0x160] sm:$0xff] }
 0x1d4   :  { %642 = vmatprep.subr.mxu1 %v546_v62  ;;  %v2591_v62 = vld [vmem:[%s3133_s9 + $0x60] sm:$0xff] }
 0x1d5   :  { %643 = vmatpush1.msra.mxu1 %v545_v63  ;;  %v2598_v63 = vld [vmem:[%s3133_s9 + $0xd8] sm:$0xff] }
 0x1d6   :  { %644 = vmatprep.subr.mxu1 %v543_v0  ;;  %v2605_v0 = vld [vmem:[%s3133_s9 + $0x158] sm:$0xff] }
 0x1d7   :  { %645 = vmatpush1.msra.mxu1 %v542_v1  ;;  %v2610_v1 = vld [vmem:[%s3133_s9 + $0x58] sm:$0xff] }
 0x1d8   :  { %646 = vmatprep.subr.mxu1 %v540_v2  ;;  %v2617_v2 = vld [vmem:[%s3133_s9 + $0xd0] sm:$0xff] }
 0x1d9   :  { %647 = vmatpush1.msra.mxu1 %v539_v3  ;;  %v2624_v3 = vld [vmem:[%s3133_s9 + $0x150] sm:$0xff] }
 0x1da   :  { %648 = vmatprep.subr.mxu1 %v537_v5  ;;  %v2629_v5 = vld [vmem:[%s3133_s9 + $0x50] sm:$0xff] }
 0x1db   :  { %649 = vmatpush1.msra.mxu1 %v536_v6  ;;  %v2636_v6 = vld [vmem:[%s3133_s9 + $0xc8] sm:$0xff] }
 0x1dc   :  { %650 = vmatprep.subr.mxu1 %v534_v7  ;;  %v2643_v7 = vld [vmem:[%s3133_s9 + $0x148] sm:$0xff] }
 0x1dd   :  { %651 = vmatpush1.msra.mxu1 %v533_v8  ;;  %v2648_v8 = vld [vmem:[%s3133_s9 + $0x48] sm:$0xff] }
 0x1de   :  { %652 = vmatprep.subr.mxu1 %v531_v9  ;;  %v2655_v9 = vld [vmem:[%s3133_s9 + $0xc0] sm:$0xff] }
 0x1df   :  { %653 = vmatpush1.msra.mxu1 %v530_v10  ;;  %v2662_v10 = vld [vmem:[%s3133_s9 + $0x140] sm:$0xff] }
 0x1e0   :  { %670 = vmatprep.subr.mxu1 %v600_v11  ;;  %v2667_v11 = vld [vmem:[%s3133_s9 + $0x40] sm:$0xff] }
 0x1e1   :  { %671 = vmatpush2.msra.mxu1 %v599_v12  ;;  %v2674_v12 = vld [vmem:[%s3133_s9 + $0xb8] sm:$0xff] }
 0x1e2   :  { %672 = vmatprep.subr.mxu1 %v597_v13  ;;  %v2681_v13 = vld [vmem:[%s3133_s9 + $0x138] sm:$0xff] }
 0x1e3   :  { %673 = vmatpush2.msra.mxu1 %v596_v14  ;;  %v2686_v14 = vld [vmem:[%s3133_s9 + $0x38] sm:$0xff] }
 0x1e4   :  { %674 = vmatprep.subr.mxu1 %v594_v16  ;;  %v2700_v16 = vld [vmem:[%s3133_s9 + $0x130] sm:$0xff] }
 0x1e5   :  { %675 = vmatpush2.msra.mxu1 %v593_v17  ;;  %v2705_v17 = vld [vmem:[%s3133_s9 + $0x30] sm:$0xff] }
 0x1e6   :  { %676 = vmatprep.subr.mxu1 %v591_v19  ;;  %v2719_v19 = vld [vmem:[%s3133_s9 + $0x128] sm:$0xff] }
 0x1e7   :  { %677 = vmatpush2.msra.mxu1 %v590_v20  ;;  %v2724_v20 = vld [vmem:[%s3133_s9 + $0x28] sm:$0xff] }
 0x1e8   :  { %678 = vmatprep.subr.mxu1 %v588_v22  ;;  %v2738_v22 = vld [vmem:[%s3133_s9 + $0x120] sm:$0xff] }
 0x1e9   :  { %679 = vmatpush2.msra.mxu1 %v587_v23  ;;  %v2743_v23 = vld [vmem:[%s3133_s9 + $0x20] sm:$0xff] }
 0x1ea   :  { %680 = vmatprep.subr.mxu1 %v585_v25  ;;  %v2757_v25 = vld [vmem:[%s3133_s9 + $0x118] sm:$0xff] }
 0x1eb   :  { %681 = vmatpush2.msra.mxu1 %v584_v26  ;;  %v2762_v26 = vld [vmem:[%s3133_s9 + $0x18] sm:$0xff] }
 0x1ec   :  { %682 = vmatprep.subr.mxu1 %v582_v28  ;;  %v2776_v28 = vld [vmem:[%s3133_s9 + $0x110] sm:$0xff] }
 0x1ed   :  { %683 = vmatpush2.msra.mxu1 %v581_v29  ;;  %v2785_v29 = vld [vmem:[%s3133_s9 + $0x108] sm:$0xff] }
 0x1ee   :  { %684 = vmatprep.subr.mxu1 %v579_v31  ;;  %v2800_v31 = vld [vmem:[%s3133_s9 + $0x88] sm:$0xff] }
 0x1ef   :  { %685 = vmatpush2.msra.mxu1 %v578_v32  ;;  %v2805_v32 = vld [vmem:[%s3133_s9 + $0x100] sm:$0xff] }
 0x1f0   :  { %1678 = vmatprep.subr.mxu1 %v2519_v34 }
 0x27c   :  { %v429_v35 = vpop.f32.mrf.mxu1 }
 0x27d   :  { %v511_v36 = vrot.slane %v429_v35, %v2234_v40  ;;  %v2820_v35 = vld [vmem:[%s3133_s9 + $0x80] sm:$0xff] }
 0x27e   :  { %v431_v37 = vpop.f32.mrf.mxu1 }
 0x27f   :  { %v515_v38 = vrot.slane %v431_v37, %v2234_v40  ;;  %v516_v44 = vmul.f32 %v511_v36, %v2243_v46  ;;  %v2543_v46 = vld [vmem:[%s3133_s9 + $0xf0] sm:$0xff]  ;;  %v2827_v36 = vld [vmem:[%s3133_s9] sm:$0xff]  ;;  %v614_v37 = vsub.s32 2, %v2231_v39 }
 0x280   :  { %v503_v41 = vpop.f32.mrf.mxu1 }
 0x281   :  { %v521_v43 = vrot.slane %v503_v41, %v2234_v40  ;;  %v517_v47 = vmul.f32 %v515_v38, %v2245_v48  ;;  %v2548_v48 = vld [vmem:[%s3133_s9 + $0x170] sm:$0xff]  ;;  %v602_v38 = vld [vmem:[%s3132_s8] sm:$0x7] }
 0x282   :  { %v505_v45 = vpop.f32.mrf.mxu1  ;;  %v615_v41 = vrot.slane %v602_v38, %v614_v37  ;;  %v1475_v37 = vld [vmem:[%s3137_s13 + $0xe8] sm:$0xff] }
 0x283   :  { %v525_v49 = vrot.slane %v505_v45, %v2234_v40  ;;  %v526_v50 = vadd.f32 %v521_v43, %v516_v44  ;;  %v611_v43 = vrot.slane %v602_v38, %v72_v42  ;;  %v607_v44 = vrot.slane %v602_v38, %v2234_v40  ;;  %v1491_v38 = vld [vmem:[%s3137_s13 + $0x168] sm:$0xff] }
 0x285   :  { %v527_v51 = vadd.f32 %v525_v49, %v517_v47  ;;  %v528_v53 = vmax.f32 %v526_v50, 0.0 }
 0x287   :  { %v529_v52 = vmax.f32 %v527_v51, 0.0 }
 0x289   :  { %1671 = vmatprep.mubr.msk.f32.mxu1 %vm178_vm1, %v529_v52  ;;  %1672 = vmatprep.mubr.msk.f32.mxu0 %vm178_vm1, %v529_v52 }
 0x28a   :  { %687 = vmatmul.mubr.f32.vlgmr.msra.gmra.mxu1 %v528_v53  ;;  %758 = vmatmul.mubr.f32.vlgmr.msra.gmra.mxu0 %v528_v53 }
 0x28b   :  { %1839 = vmatpush3.msra.mxu0 %v2531_v54  ;;  %1679 = vmatpush3.msra.mxu1 %v2536_v55 }
 0x28c   :  { %1840 = vmatprep.subr.mxu0 %v1987_v4  ;;  %1680 = vmatprep.subr.mxu1 %v2543_v46 }
 0x28d   :  { %1841 = vmatpush3.msra.mxu0 %v2548_v48  ;;  %1681 = vmatpush3.msra.mxu1 %v2553_v56 }
 0x28e   :  { %1842 = vmatprep.subr.mxu0 %v1987_v4  ;;  %1682 = vmatprep.subr.mxu1 %v2560_v57 }
 0x28f   :  { %1843 = vmatpush3.msra.mxu0 %v2567_v58  ;;  %1683 = vmatpush3.msra.mxu1 %v2572_v59 }
 0x290   :  { %1844 = vmatprep.subr.mxu0 %v1987_v4  ;;  %1684 = vmatprep.subr.mxu1 %v2579_v60 }
 0x291   :  { %1845 = vmatpush3.msra.mxu0 %v2586_v61  ;;  %1685 = vmatpush3.msra.mxu1 %v2591_v62 }
 0x292   :  { %1846 = vmatprep.subr.mxu0 %v1987_v4  ;;  %1686 = vmatprep.subr.mxu1 %v2598_v63 }
 0x293   :  { %1847 = vmatpush3.msra.mxu0 %v2605_v0  ;;  %1687 = vmatpush3.msra.mxu1 %v2610_v1 }
 0x294   :  { %1848 = vmatprep.subr.mxu0 %v1987_v4  ;;  %1688 = vmatprep.subr.mxu1 %v2617_v2 }
 0x295   :  { %1849 = vmatpush3.msra.mxu0 %v2624_v3  ;;  %1689 = vmatpush3.msra.mxu1 %v2629_v5 }
 0x296   :  { %1850 = vmatprep.subr.mxu0 %v1987_v4  ;;  %1690 = vmatprep.subr.mxu1 %v2636_v6 }
 0x297   :  { %1851 = vmatpush3.msra.mxu0 %v2643_v7  ;;  %1691 = vmatpush3.msra.mxu1 %v2648_v8 }
 0x298   :  { %1852 = vmatprep.subr.mxu0 %v1987_v4  ;;  %1692 = vmatprep.subr.mxu1 %v2655_v9 }
 0x299   :  { %1853 = vmatpush3.msra.mxu0 %v2662_v10  ;;  %1693 = vmatpush3.msra.mxu1 %v2667_v11 }
 0x29a   :  { %1854 = vmatprep.subr.mxu0 %v1987_v4  ;;  %1694 = vmatprep.subr.mxu1 %v2674_v12 }
 0x29b   :  { %1855 = vmatpush3.msra.mxu0 %v2681_v13  ;;  %1695 = vmatpush3.msra.mxu1 %v2686_v14 }
 0x29c   :  { %1856 = vmatprep.subr.mxu0 %v1987_v4  ;;  %1696 = vmatprep.subr.mxu1 %v2693_v15 }
 0x29d   :  { %1857 = vmatpush3.msra.mxu0 %v2700_v16  ;;  %1697 = vmatpush3.msra.mxu1 %v2705_v17 }
 0x29e   :  { %1858 = vmatprep.subr.mxu0 %v1987_v4  ;;  %1698 = vmatprep.subr.mxu1 %v2712_v18 }
 0x29f   :  { %1859 = vmatpush3.msra.mxu0 %v2719_v19  ;;  %1699 = vmatpush3.msra.mxu1 %v2724_v20 }
 0x2a0   :  { %1860 = vmatprep.subr.mxu0 %v1987_v4  ;;  %1700 = vmatprep.subr.mxu1 %v2731_v21 }
 0x2a1   :  { %1861 = vmatpush3.msra.mxu0 %v2738_v22  ;;  %1701 = vmatpush3.msra.mxu1 %v2743_v23 }
 0x2a2   :  { %1862 = vmatprep.subr.mxu0 %v1987_v4  ;;  %1702 = vmatprep.subr.mxu1 %v2750_v24 }
 0x2a3   :  { %1863 = vmatpush3.msra.mxu0 %v2757_v25  ;;  %1703 = vmatpush3.msra.mxu1 %v2762_v26 }
 0x2a4   :  { %1864 = vmatprep.subr.mxu0 %v1987_v4  ;;  %1704 = vmatprep.subr.mxu1 %v2769_v27 }
 0x2a5   :  { %1865 = vmatpush3.msra.mxu0 %v2776_v28  ;;  %1705 = vmatpush3.msra.mxu1 %v2794_v30 }
 0x2a6   :  { %1866 = vmatprep.subr.mxu0 %v1987_v4  ;;  %1706 = vmatprep.subr.mxu1 %v2800_v31 }
 0x2a7   :  { %1867 = vmatpush3.msra.mxu0 %v2785_v29  ;;  %1707 = vmatpush3.msra.mxu1 %v2812_v33 }
 0x2a8   :  { %1868 = vmatprep.subr.mxu0 %v1987_v4  ;;  %1870 = vmatprep.mubr.msk.f32.mxu0 %vm1988_vm5, %v1987_v4 }
 0x2a9   :  { %1869 = vmatpush3.msra.mxu0 %v2805_v32  ;;  %1708 = vmatprep.subr.mxu1 %v2820_v35 }
 0x2aa   :  { %1873 = vmatprep.subr.mxu0 %v1987_v4  ;;  %1709 = vmatpush3.msra.mxu1 %v2827_v36 }
 0x2ab   :  { %1730 = vmatprep.subr.mxu1 %v2519_v34 }
 0x34a   :  { %v688_v45 = vpop.f32.mrf.mxu1  ;;  %v759_v47 = vpop.f32.mrf.mxu0 }
 0x34b   :  { %v2838_v49 = vadd.f32 %v759_v47, %v615_v41  ;;  %v2843_v34 = vadd.f32 %v688_v45, %v607_v44  ;;  %v1459_v41 = vld [vmem:[%s3137_s13 + $0x68] sm:$0xff]  ;;  %v1490_v44 = vld [vmem:[%s3137_s13 + $0x160] sm:$0xff]  ;;  %v1473_v47 = vld [vmem:[%s3137_s13 + $0xd8] sm:$0xff] }
 0x34c   :  { %v690_v50 = vpop.f32.mrf.mxu1  ;;  %v761_v51 = vpop.f32.mrf.mxu0  ;;  %v1458_v45 = vld [vmem:[%s3137_s13 + $0x60] sm:$0xff] }
 0x34d   :  { %v2840_v52 = vadd.f32 %v690_v50, %v611_v43  ;;  %1871 = vmatmul.mubr.f32.vlgmr.msra.gmra.mxu0 %v2838_v49  ;;  %v966_v42 = vmul.f32 %v2838_v49, %v2838_v49  ;;  %v964_v53 = vmul.f32 %v2843_v34, %v2843_v34  ;;  %v1474_v43 = vld [vmem:[%s3137_s13 + $0xe0] sm:$0xff]  ;;  %v1489_v50 = vld [vmem:[%s3137_s13 + $0x158] sm:$0xff] }
 0x34e   :  { %1874 = vmatpush3.msra.mxu0 %v2531_v54  ;;  %1905 = vmatprep.mubr.msk.f32.mxu0 %vm1988_vm5, %v1987_v4  ;;  %v812_v54 = vld [vmem:[%s3134_s10 + $0x8] sm:$0xff]  ;;  %v1457_v51 = vld [vmem:[%s3137_s13 + $0x58] sm:$0xff] }
 0x34f   :  { %1875 = vmatprep.subr.mxu0 %v1987_v4  ;;  %880 = vmatprep.mubr.f32.mxu1 %v2840_v52  ;;  %v965_v39 = vmul.f32 %v2840_v52, %v2840_v52 }
 0x350   :  { %1876 = vmatpush3.msra.mxu0 %v2548_v48  ;;  %881 = vmatmul.mubr.f32.vlgmr.msra.gmra.mxu1 %v2843_v34 }
 0x351   :  { %1731 = vmatpush3.msra.mxu1 %v2536_v55  ;;  %1877 = vmatprep.subr.mxu0 %v1987_v4  ;;  %v811_v55 = vld [vmem:[%s3134_s10] sm:$0xff] }
 0x352   :  { %1732 = vmatprep.subr.mxu1 %v2543_v46  ;;  %1031 = vmatprep.mubr.f32.mxu1 %v965_v39  ;;  %v813_v46 = vld [vmem:[%s3134_s10 + $0x10] sm:$0xff] }
 0x353   :  { %1878 = vmatpush3.msra.mxu0 %v2567_v58  ;;  %1733 = vmatpush3.msra.mxu1 %v2553_v56  ;;  %v1472_v39 = vld [vmem:[%s3137_s13 + $0xd0] sm:$0xff] }
 0x354   :  { %1879 = vmatprep.subr.mxu0 %v1987_v4  ;;  %1734 = vmatprep.subr.mxu1 %v2560_v57 }
 0x355   :  { %1880 = vmatpush3.msra.mxu0 %v2586_v61  ;;  %1735 = vmatpush3.msra.mxu1 %v2572_v59 }
 0x356   :  { %1881 = vmatprep.subr.mxu0 %v1987_v4  ;;  %1736 = vmatprep.subr.mxu1 %v2579_v60 }
 0x357   :  { %1882 = vmatpush3.msra.mxu0 %v2605_v0  ;;  %1737 = vmatpush3.msra.mxu1 %v2591_v62 }
 0x358   :  { %1883 = vmatprep.subr.mxu0 %v1987_v4  ;;  %1738 = vmatprep.subr.mxu1 %v2598_v63 }
 0x359   :  { %1884 = vmatpush3.msra.mxu0 %v2624_v3  ;;  %1739 = vmatpush3.msra.mxu1 %v2610_v1 }
 0x35a   :  { %1885 = vmatprep.subr.mxu0 %v1987_v4  ;;  %1740 = vmatprep.subr.mxu1 %v2617_v2 }
 0x35b   :  { %1886 = vmatpush3.msra.mxu0 %v2643_v7  ;;  %1741 = vmatpush3.msra.mxu1 %v2629_v5 }
 0x35c   :  { %1887 = vmatprep.subr.mxu0 %v1987_v4  ;;  %1742 = vmatprep.subr.mxu1 %v2636_v6 }
 0x35d   :  { %1888 = vmatpush3.msra.mxu0 %v2662_v10  ;;  %1743 = vmatpush3.msra.mxu1 %v2648_v8 }
 0x35e   :  { %1889 = vmatprep.subr.mxu0 %v1987_v4  ;;  %1744 = vmatprep.subr.mxu1 %v2655_v9 }
 0x35f   :  { %1890 = vmatpush3.msra.mxu0 %v2681_v13  ;;  %1745 = vmatpush3.msra.mxu1 %v2667_v11 }
 0x360   :  { %1891 = vmatprep.subr.mxu0 %v1987_v4  ;;  %1746 = vmatprep.subr.mxu1 %v2674_v12 }
 0x361   :  { %1892 = vmatpush3.msra.mxu0 %v2700_v16  ;;  %1747 = vmatpush3.msra.mxu1 %v2686_v14 }
 0x362   :  { %1893 = vmatprep.subr.mxu0 %v1987_v4  ;;  %1748 = vmatprep.subr.mxu1 %v2693_v15 }
 0x363   :  { %1894 = vmatpush3.msra.mxu0 %v2719_v19  ;;  %1749 = vmatpush3.msra.mxu1 %v2705_v17 }
 0x364   :  { %1895 = vmatprep.subr.mxu0 %v1987_v4  ;;  %1750 = vmatprep.subr.mxu1 %v2712_v18 }
 0x365   :  { %1896 = vmatpush3.msra.mxu0 %v2738_v22  ;;  %1751 = vmatpush3.msra.mxu1 %v2724_v20 }
 0x366   :  { %1897 = vmatprep.subr.mxu0 %v1987_v4  ;;  %1752 = vmatprep.subr.mxu1 %v2731_v21 }
 0x367   :  { %1898 = vmatpush3.msra.mxu0 %v2757_v25  ;;  %1753 = vmatpush3.msra.mxu1 %v2743_v23 }
 0x368   :  { %1899 = vmatprep.subr.mxu0 %v1987_v4  ;;  %1754 = vmatprep.subr.mxu1 %v2750_v24  ;;  %v814_v24 = vld [vmem:[%s3135_s11] sm:$0x1] }
 0x369   :  { %1900 = vmatpush3.msra.mxu0 %v2776_v28  ;;  %1755 = vmatpush3.msra.mxu1 %v2762_v26 }
 0x36a   :  { %1901 = vmatprep.subr.mxu0 %v1987_v4  ;;  %1756 = vmatprep.subr.mxu1 %v2769_v27  ;;  %v815_v27 = vld [vmem:[%s3136_s12] sm:$0x1] }
 0x36b   :  { %1902 = vmatpush3.msra.mxu0 %v2785_v29  ;;  %1757 = vmatpush3.msra.mxu1 %v2794_v30  ;;  %v1477_v29 = vld [vmem:[%s3137_s13 + $0xf8] sm:$0xff] }
 0x36c   :  { %1903 = vmatprep.subr.mxu0 %v1987_v4  ;;  %1758 = vmatprep.subr.mxu1 %v2800_v31  ;;  %v1493_v31 = vld [vmem:[%s3137_s13 + $0x178] sm:$0xff] }
 0x36d   :  { %1904 = vmatpush3.msra.mxu0 %v2805_v32  ;;  %1759 = vmatpush3.msra.mxu1 %v2812_v33  ;;  %v1461_v32 = vld [vmem:[%s3137_s13 + $0x78] sm:$0xff]  ;;  %v1476_v33 = vld [vmem:[%s3137_s13 + $0xf0] sm:$0xff] }
 0x36e   :  { %1906 = vmatmul.mubr.f32.vlgmr.msra.gmra.mxu0 %v966_v42  ;;  %1760 = vmatprep.subr.mxu1 %v2820_v35  ;;  %v1492_v35 = vld [vmem:[%s3137_s13 + $0x170] sm:$0xff] }
 0x36f   :  { %1761 = vmatpush3.msra.mxu1 %v2827_v36  ;;  %1908 = vmatprep.subr.mxu0 %v1987_v4  ;;  %v1460_v36 = vld [vmem:[%s3137_s13 + $0x70] sm:$0xff] }
 0x370   :  { %1032 = vmatmul.mubr.f32.vlgmr.msra.gmra.mxu1 %v964_v53  ;;  %1910 = vmatprep.mubr.msk.f32.mxu0 %vm1988_vm5, %v1987_v4  ;;  %v1488_v42 = vld [vmem:[%s3137_s13 + $0x150] sm:$0xff] }
 0x371   :  { %1192 = vmatprep.mubr.f32.mxu1 %v1987_v4  ;;  %1158 = vmatprep.subr.mxu1 %v812_v54  ;;  %v1456_v53 = vld [vmem:[%s3137_s13 + $0x50] sm:$0xff] }
 0x372   :  { %1909 = vmatpush3.msra.mxu0 %v813_v46  ;;  %1159 = vmatpush1.msra.mxu1 %v811_v55 }
 0x373   :  { %1913 = vmatprep.subr.mxu0 %v1987_v4  ;;  %1302 = vmatprep.subr.mxu1 %v812_v54  ;;  %v1471_v54 = vld [vmem:[%s3137_s13 + $0xc8] sm:$0xff] }
 0x40d   :  { %v952_v48 = vpop.f32.mrf.mxu0 }
 0x40f   :  { %v1872_v56 = vpop.f32.mrf.mxu0 }
 0x410   :  { %v1710_v57 = vpop.f32.mrf.mxu1  ;;  %v1486_v56 = vld [vmem:[%s3137_s13 + $0x140] sm:$0xff] }
 0x412   :  { %v1711_v58 = vpop.f32.mrf.mxu1 }
 0x413   :  { %v1712_v59 = vadd.f32 %v1711_v58, %v1710_v57  ;;  %v1454_v57 = vld [vmem:[%s3137_s13 + $0x40] sm:$0xff]  ;;  %v1469_v58 = vld [vmem:[%s3137_s13 + $0xb8] sm:$0xff] }
 0x415   :  { %v953_v60 = vadd.f32 %v1712_v59, %v952_v48  ;;  %v1470_v48 = vld [vmem:[%s3137_s13 + $0xc0] sm:$0xff]  ;;  %v1485_v59 = vld [vmem:[%s3137_s13 + $0x138] sm:$0xff] }
 0x417   :  { %v957_v61 = vsel %vm956_vm6, %v953_v60, 0.0  ;;  %v1453_v60 = vld [vmem:[%s3137_s13 + $0x38] sm:$0xff] }
 0x418   :  { %v958_v62 = vrot.slane %v957_v61, 4 }
 0x41a   :  { %v959_v63 = vadd.f32 %v958_v62, %v957_v61  ;;  %v1484_v61 = vld [vmem:[%s3137_s13 + $0x130] sm:$0xff] }
 0x41b   :  { %v1468_v62 = vld [vmem:[%s3137_s13 + $0xb0] sm:$0xff] }
 0x41c   :  { %v960_v1 = vrot.slane %v959_v63, 2 }
 0x41e   :  { %v961_v7 = vadd.f32 %v960_v1, %v959_v63  ;;  %v1483_v63 = vld [vmem:[%s3137_s13 + $0x128] sm:$0xff] }
 0x41f   :  { %v1467_v1 = vld [vmem:[%s3137_s13 + $0xa8] sm:$0xff] }
 0x420   :  { %v962_v10 = vrot.slane %v961_v7, 1 }
 0x422   :  { %v963_v13 = vadd.f32 %v962_v10, %v961_v7  ;;  %v1450_v7 = vld [vmem:[%s3137_s13 + $0x20] sm:$0xff]  ;;  %v1449_v10 = vld [vmem:[%s3137_s13 + $0x18] sm:$0xff] }
 0x424   :  { %v1114_v16 = vmul.f32 0.010416667, %v963_v13  ;;  %v1448_v13 = vld [vmem:[%s3137_s13 + $0x10] sm:$0xff] }
 0x426   :  { %v1116_v19 = vmul.f32 %v1114_v16, %v1114_v16 }
 0x42e   :  { %v1103_v0 = vpop.f32.mrf.mxu0 }
 0x430   :  { %v1907_v2 = vpop.f32.mrf.mxu0  ;;  %v1762_v3 = vpop.f32.mrf.mxu1 }
 0x431   :  { %v1482_v2 = vld [vmem:[%s3137_s13 + $0x120] sm:$0xff] }
 0x432   :  { %v1763_v5 = vpop.f32.mrf.mxu1 }
 0x433   :  { %v1764_v6 = vadd.f32 %v1763_v5, %v1762_v3  ;;  %v1451_v3 = vld [vmem:[%s3137_s13 + $0x28] sm:$0xff]  ;;  %v1466_v5 = vld [vmem:[%s3137_s13 + $0xa0] sm:$0xff] }
 0x435   :  { %v1104_v8 = vadd.f32 %v1764_v6, %v1103_v0  ;;  %v1452_v0 = vld [vmem:[%s3137_s13 + $0x30] sm:$0xff]  ;;  %v1481_v6 = vld [vmem:[%s3137_s13 + $0x118] sm:$0xff] }
 0x437   :  { %v1107_v9 = vsel %vm956_vm6, %v1104_v8, 0.0  ;;  %v1465_v8 = vld [vmem:[%s3137_s13 + $0x98] sm:$0xff] }
 0x438   :  { %v1108_v11 = vrot.slane %v1107_v9, 4 }
 0x43a   :  { %v1109_v12 = vadd.f32 %v1108_v11, %v1107_v9  ;;  %v1480_v9 = vld [vmem:[%s3137_s13 + $0x110] sm:$0xff] }
 0x43b   :  { %v1464_v11 = vld [vmem:[%s3137_s13 + $0x90] sm:$0xff] }
 0x43c   :  { %v1110_v14 = vrot.slane %v1109_v12, 2 }
 0x43e   :  { %v1111_v15 = vadd.f32 %v1110_v14, %v1109_v12  ;;  %v1479_v12 = vld [vmem:[%s3137_s13 + $0x108] sm:$0xff] }
 0x43f   :  { %v1463_v14 = vld [vmem:[%s3137_s13 + $0x88] sm:$0xff] }
 0x440   :  { %v1112_v17 = vrot.slane %v1111_v15, 1 }
 0x442   :  { %v1113_v18 = vadd.f32 %v1112_v17, %v1111_v15  ;;  %v1478_v15 = vld [vmem:[%s3137_s13 + $0x100] sm:$0xff] }
 0x443   :  { %v1462_v17 = vld [vmem:[%s3137_s13 + $0x80] sm:$0xff] }
 0x444   :  { %v1115_v20 = vmul.f32 0.010416667, %v1113_v18 }
 0x446   :  { %v1117_v21 = vsub.f32 %v1115_v20, %v1116_v19 }
 0x448   :  { %v1118_v22 = vmax.f32 %v1117_v21, 0.0 }
 0x44a   :  { %v1119_v23 = vadd.f32 1e-05, %v1118_v22 }
 0x44c   :  { %1959 = vrsqrt.f32 %v1119_v23 }
 0x459   :  { %v1960_v25 = vpop.eup %1959 }
 0x45a   :  { %v1121_v26 = vmul.f32 %v1960_v25, %v814_v24 }
 0x45c   :  { %1673 = vmatmul.mubr.msk.f32.vlgmr.msra.gmra.mxu1 %vm1124_vm7, %v1121_v26  ;;  %1911 = vmatmul.mubr.msk.f32.vlgmr.msra.gmra.mxu0 %vm1124_vm7, %v1121_v26  ;;  %v1122_v28 = vmul.f32 %v1121_v26, %v1114_v16  ;;  %v1447_v16 = vld [vmem:[%s3137_s13 + $0x8] sm:$0xff] }
 0x45d   :  { %1303 = vmatpush1.msra.mxu1 %v811_v55  ;;  %1336 = vmatprep.mubr.f32.mxu1 %v1987_v4  ;;  %v1487_v55 = vld [vmem:[%s3137_s13 + $0x148] sm:$0xff] }
 0x45e   :  { %1914 = vmatpush3.msra.mxu0 %v813_v46  ;;  %1915 = vmatprep.mubr.msk.f32.mxu0 %vm1988_vm5, %v1987_v4  ;;  %v1123_v30 = vsub.f32 %v815_v27, %v1122_v28  ;;  %v1455_v46 = vld [vmem:[%s3137_s13 + $0x48] sm:$0xff] }
 0x45f   :  { %1918 = vmatprep.subr.mxu0 %v1987_v4  ;;  %1786 = vmatprep.subr.mxu1 %v1477_v29 }
 0x460   :  { %1675 = vmatmul.mubr.msk.f32.vlgmr.msra.gmra.mxu1 %vm1124_vm7, %v1123_v30  ;;  %1916 = vmatmul.mubr.msk.f32.vlgmr.msra.gmra.mxu0 %vm1124_vm7, %v1123_v30 }
 0x461   :  { %1919 = vmatpush3.msra.mxu0 %v1493_v31  ;;  %1787 = vmatpush3.msra.mxu1 %v1461_v32 }
 0x462   :  { %1920 = vmatprep.subr.mxu0 %v1987_v4  ;;  %1788 = vmatprep.subr.mxu1 %v1476_v33 }
 0x463   :  { %1921 = vmatpush3.msra.mxu0 %v1492_v35  ;;  %1789 = vmatpush3.msra.mxu1 %v1460_v36 }
 0x464   :  { %1922 = vmatprep.subr.mxu0 %v1987_v4  ;;  %1790 = vmatprep.subr.mxu1 %v1475_v37 }
 0x465   :  { %1923 = vmatpush3.msra.mxu0 %v1491_v38  ;;  %1791 = vmatpush3.msra.mxu1 %v1459_v41 }
 0x466   :  { %1924 = vmatprep.subr.mxu0 %v1987_v4  ;;  %1792 = vmatprep.subr.mxu1 %v1474_v43 }
 0x467   :  { %1925 = vmatpush3.msra.mxu0 %v1490_v44  ;;  %1793 = vmatpush3.msra.mxu1 %v1458_v45 }
 0x468   :  { %1926 = vmatprep.subr.mxu0 %v1987_v4  ;;  %1794 = vmatprep.subr.mxu1 %v1473_v47 }
 0x469   :  { %1927 = vmatpush3.msra.mxu0 %v1489_v50  ;;  %1795 = vmatpush3.msra.mxu1 %v1457_v51 }
 0x46a   :  { %1928 = vmatprep.subr.mxu0 %v1987_v4  ;;  %1796 = vmatprep.subr.mxu1 %v1472_v39 }
 0x46b   :  { %1929 = vmatpush3.msra.mxu0 %v1488_v42  ;;  %1797 = vmatpush3.msra.mxu1 %v1456_v53 }
 0x46c   :  { %1930 = vmatprep.subr.mxu0 %v1987_v4  ;;  %1798 = vmatprep.subr.mxu1 %v1471_v54 }
 0x46d   :  { %1931 = vmatpush3.msra.mxu0 %v1487_v55  ;;  %1799 = vmatpush3.msra.mxu1 %v1455_v46 }
 0x46e   :  { %1932 = vmatprep.subr.mxu0 %v1987_v4  ;;  %1800 = vmatprep.subr.mxu1 %v1470_v48 }
 0x46f   :  { %1933 = vmatpush3.msra.mxu0 %v1486_v56  ;;  %1801 = vmatpush3.msra.mxu1 %v1454_v57 }
 0x470   :  { %1934 = vmatprep.subr.mxu0 %v1987_v4  ;;  %1802 = vmatprep.subr.mxu1 %v1469_v58 }
 0x471   :  { %1935 = vmatpush3.msra.mxu0 %v1485_v59  ;;  %1803 = vmatpush3.msra.mxu1 %v1453_v60 }
 0x472   :  { %1936 = vmatprep.subr.mxu0 %v1987_v4  ;;  %1950 = vmatprep.mubr.msk.f32.mxu0 %vm1988_vm5, %v1987_v4 }
 0x473   :  { %1937 = vmatpush3.msra.mxu0 %v1484_v61  ;;  %1804 = vmatprep.subr.mxu1 %v1468_v62 }
 0x474   :  { %1938 = vmatprep.subr.mxu0 %v1987_v4  ;;  %1805 = vmatpush3.msra.mxu1 %v1452_v0 }
 0x475   :  { %1939 = vmatpush3.msra.mxu0 %v1483_v63  ;;  %1806 = vmatprep.subr.mxu1 %v1467_v1 }
 0x476   :  { %1940 = vmatprep.subr.mxu0 %v1987_v4  ;;  %1807 = vmatpush3.msra.mxu1 %v1451_v3 }
 0x477   :  { %1941 = vmatpush3.msra.mxu0 %v1482_v2  ;;  %1808 = vmatprep.subr.mxu1 %v1466_v5 }
 0x478   :  { %1942 = vmatprep.subr.mxu0 %v1987_v4  ;;  %1809 = vmatpush3.msra.mxu1 %v1450_v7 }
 0x479   :  { %1943 = vmatpush3.msra.mxu0 %v1481_v6  ;;  %1810 = vmatprep.subr.mxu1 %v1465_v8 }
 0x47a   :  { %1944 = vmatprep.subr.mxu0 %v1987_v4  ;;  %1811 = vmatpush3.msra.mxu1 %v1449_v10 }
 0x47b   :  { %1945 = vmatpush3.msra.mxu0 %v1480_v9  ;;  %1812 = vmatprep.subr.mxu1 %v1464_v11 }
 0x47c   :  { %1946 = vmatprep.subr.mxu0 %v1987_v4  ;;  %1813 = vmatpush3.msra.mxu1 %v1448_v13 }
 0x47d   :  { %1947 = vmatpush3.msra.mxu0 %v1479_v12  ;;  %1814 = vmatprep.subr.mxu1 %v1463_v14 }
 0x47e   :  { %1948 = vmatprep.subr.mxu0 %v1987_v4  ;;  %v1446_v4 = vld [vmem:[%s3137_s13] sm:$0xff]  ;;  %1815 = vmatpush3.msra.mxu1 %v1447_v16 }
 0x47f   :  { %1949 = vmatpush3.msra.mxu0 %v1478_v15  ;;  %1816 = vmatprep.subr.mxu1 %v1462_v17 }
 0x480   :  { %1817 = vmatpush3.msra.mxu1 %v1446_v4 }
 0x51c   :  { %v1194_v18 = vpop.f32.mrf.mxu1  ;;  %v1265_v19 = vpop.f32.mrf.mxu0 }
 0x51d   :  { %v1424_v20 = vrot.slane %v1265_v19, %v2234_v40  ;;  %v1416_v21 = vrot.slane %v1194_v18, %v2234_v40 }
 0x51e   :  { %v1196_v22 = vpop.f32.mrf.mxu1  ;;  %v1912_v23 = vpop.f32.mrf.mxu0 }
 0x51f   :  { %v1420_v24 = vrot.slane %v1196_v22, %v2234_v40  ;;  %v1427_v27 = vmul.f32 %v1424_v20, %v2838_v49  ;;  %v1425_v30 = vmul.f32 %v1416_v21, %v2843_v34  ;;  %v1677_v34 = vld [vmem:[%s3138_s14] ss:$0 sm:$0xff] }
 0x520   :  { %v1338_v25 = vpop.f32.mrf.mxu1  ;;  %v1409_v26 = vpop.f32.mrf.mxu0 }
 0x521   :  { %v1431_v28 = vrot.slane %v1338_v25, %v2234_v40  ;;  %v1439_v29 = vrot.slane %v1409_v26, %v2234_v40  ;;  %v1426_v33 = vmul.f32 %v1420_v24, %v2840_v52 }
 0x522   :  { %v1340_v31 = vpop.f32.mrf.mxu1  ;;  %v1917_v32 = vpop.f32.mrf.mxu0 }
 0x523   :  { %v1442_v35 = vadd.f32 %v1439_v29, %v1427_v27  ;;  %v1435_v36 = vrot.slane %v1340_v31, %v2234_v40  ;;  %v1440_v37 = vadd.f32 %v1431_v28, %v1425_v30 }
 0x525   :  { %v1445_v38 = vmax.f32 %v1442_v35, 0.0  ;;  %v1441_v41 = vadd.f32 %v1435_v36, %v1426_v33  ;;  %v1443_v44 = vmax.f32 %v1440_v37, 0.0 }
 0x527   :  { %v1444_v43 = vmax.f32 %v1441_v41, 0.0  ;;  %1951 = vmatmul.mubr.f32.vlgmr.msra.gmra.mxu0 %v1445_v38 }
 0x529   :  { %1565 = vmatprep.mubr.f32.mxu1 %v1444_v43 }
 0x52a   :  { %1566 = vmatmul.mubr.f32.vlgmr.msra.gmra.mxu1 %v1443_v44 }
 0x5e7   :  { %v1637_v49 = vpop.f32.mrf.mxu0 }
 0x5e9   :  { %v1952_v45 = vpop.f32.mrf.mxu0 }
 0x5ea   :  { %v1818_v47 = vpop.f32.mrf.mxu1 }
 0x5ec   :  { %v1819_v50 = vpop.f32.mrf.mxu1 }
 0x5ed   :  { %v1820_v52 = vadd.f32 %v1819_v50, %v1818_v47 }
 0x5ef   :  { %v1568_v51 = vadd.f32 %v1820_v52, %v1677_v34 }
 0x5f1   :  { %v1638_v39 = vadd.f32 %v1637_v49, %v1568_v51 }
 0x5f3   :  { %v1641_v40 = vsub.f32 0.0, %v1638_v39 }
 0x5f5   :  { %v1642_v42 = vmul.f32 1.442695, %v1641_v40 }
 0x5f7   :  { %1961 = vpow2.f32 %v1642_v42 }
 0x604   :  { %v1962_v53 = vpop.eup %1961 }
 0x605   :  { %v1644_v54 = vadd.f32 1.0, %v1962_v53 }
 0x607   :  { %1963 = vrcp.f32 %v1644_v54 }
 0x614   :  { %v1964_v55 = vpop.eup %1963 }
 0x615   :  { %v1646_v46 = vadd.f32 0.01, %v1964_v55 }
 0x617   :  { %1647 = vst.msk [vmem:[#allocation2] sm:$0x3] %vm956_vm6, %v1646_v46 }
 0x618   :  { %1976 = shalt.err (!%p1973_p4)
}
 0x619   :  { %1657 = dma.vmem_to_hbm [thread:$0]  %s1655_s7, 32, %s3139_s15, [#allocation3]  }
 0x61a   :  { %1985 = dma.done.wait [#allocation3], 32  }
 0x61b   :  { %1986 = vsyncadd [#allocation3], 4294967264 }
 0x61c   :  { %1661 = vsyncpa [#allocation3], 1 }

</bundles_post_ra>
